<compile_context>
chip_gen: v7x
topology: tpu7x:2x2x1
jax: 0.10.0
libtpu: 0.0.40
codegen_flags: <defaults>
</compile_context>

<pallas_src>
import functools

import jax
import jax.numpy as jnp
from jax import lax
from jax.experimental import pallas as pl
from jax.experimental.pallas import tpu as pltpu


# ----------------------------------------------------------------------------
# Fused forward kernel: exactly 4 GEMMs, no scratch, one lane-dense store.
# ----------------------------------------------------------------------------
def _dqn_fused_kernel(cols1_ref, w1_ref, b1_ref, w2_ref, b2_ref,
                      w3_ref, b3_ref, w4_ref, b4_ref, out_ref,
                      *, tb, n_spatial, mm_dtype):
    f32 = jnp.float32

    # conv1 + ReLU: one GEMM over all conv2 taps (block-diagonal w1).
    # cols1 rows are (spatial s, batch n_local); lanes are (tap, patch-K).
    # Output lanes are (tap, conv1-channel) -> directly the conv2 LHS layout.
    y1 = jnp.dot(cols1_ref[...], w1_ref[...], preferred_element_type=f32)
    y1 = jnp.maximum(y1 + b1_ref[...], 0.0)                    # (9*tb, 128) f32

    # conv2 + ReLU: one K=128 GEMM (4 taps folded into K).
    y2 = jnp.dot(y1.astype(mm_dtype), w2_ref[...], preferred_element_type=f32)
    y2 = jnp.maximum(y2 + b2_ref[...], 0.0)                    # (9*tb, 64) f32

    # fc3 + ReLU: NCHW flatten realised as a lane-concat of 9 sublane-aligned
    # (tb, 64) slabs; w3 is pre-permuted to (spatial, channel) row order.
    lhs3 = jnp.concatenate(
        [y2[s * tb:(s + 1) * tb, :] for s in range(n_spatial)], axis=-1)
    y3 = jnp.dot(lhs3.astype(mm_dtype), w3_ref[...], preferred_element_type=f32)
    y3 = jnp.maximum(y3 + b3_ref[...], 0.0)                    # (tb, 512) f32

    # fc4: lane-padded to 128 -> single full unmasked store.
    out = jnp.dot(y3.astype(mm_dtype), w4_ref[...], preferred_element_type=f32)
    out_ref[...] = (out + b4_ref[...]).astype(out_ref.dtype)


# ----------------------------------------------------------------------------
# Wrapper: trace-time layout prep (patches / weight permutes) + pallas_call.
# ----------------------------------------------------------------------------
def dqn_forward_pallas(params, x, *, mm_dtype=jnp.bfloat16, batch_tile=256):
    """x: (N, C, H, W) float32 -> (N, num_actions) float32."""
    n, c, h, w = x.shape
    oc1, _, k1, _ = params["w1"].shape             # 32, kernel 8
    oc2 = params["w2"].shape[0]                    # 64
    hid = params["w3"].shape[1]                    # 512
    num_actions = params["w4"].shape[1]
    s1, k2, s2 = 4, 2, 2                           # conv1 stride, conv2 kernel/stride
    oh1, ow1 = (h - k1) // s1 + 1, (w - k1) // s1 + 1
    oh2, ow2 = (oh1 - k2) // s2 + 1, (ow1 - k2) // s2 + 1
    n_spatial = oh2 * ow2
    k_conv1 = c * k1 * k1
    n_taps = k2 * k2

    # --- batch tiling: rows padded to a multiple of 8; grid over batch tiles.
    tb = min(batch_tile, ((n + 7) // 8) * 8)       # tile size (multiple of 8)
    n_bp = ((n + tb - 1) // tb) * tb
    num_tiles = n_bp // tb
    rows_tile = n_spatial * tb

    xp = x if n_bp == n else jnp.pad(x, ((0, n_bp - n), (0, 0), (0, 0), (0, 0)))

    # --- conv1 im2col: one XLA patches op; cast to bf16 immediately so the
    #     transpose/pad shuffle moves half the bytes; K stays the lane axis.
    pat = lax.conv_general_dilated_patches(
        xp, (k1, k1), (s1, s1), "VALID",
        dimension_numbers=("NCHW", "OIHW", "NCHW")).astype(mm_dtype)
    pat = pat[:, :, :k2 * oh2, :k2 * ow2]                     # used conv1 pixels
    pat = pat.reshape(num_tiles, tb, k_conv1, oh2, k2, ow2, k2)
    pat = pat.transpose(0, 3, 5, 1, 4, 6, 2)     # (tile, oh2, ow2, n, kh, kw, K)
    cols1 = pat.reshape(num_tiles * rows_tile, n_taps * k_conv1)   # rows=(s,n)

    # --- weights: permute / pack once at trace time --------------------------
    w1c = params["w1"].reshape(oc1, k_conv1).T                    # (K, 32) f32
    w1_bd = jnp.zeros((n_taps * k_conv1, n_taps * oc1), jnp.float32)
    for t in range(n_taps):                                        # block-diag
        w1_bd = w1_bd.at[t * k_conv1:(t + 1) * k_conv1,
                         t * oc1:(t + 1) * oc1].set(w1c)
    w1_bd = w1_bd.astype(mm_dtype)                                 # (1024, 128)
    b1t = jnp.tile(params["b1"], n_taps).reshape(1, -1).astype(jnp.float32)

    w2s = params["w2"].transpose(2, 3, 1, 0).reshape(
        n_taps * oc1, oc2).astype(mm_dtype)                        # (128, 64)
    b2 = params["b2"].reshape(1, -1).astype(jnp.float32)

    # fc3 rows reordered from NCHW-flatten (c*9+s) to (s*64+c).
    w3c = params["w3"].reshape(oc2, n_spatial, hid).transpose(1, 0, 2).reshape(
        n_spatial * oc2, hid).astype(mm_dtype)                     # (576, 512)
    b3 = params["b3"].reshape(1, -1).astype(jnp.float32)

    na_pad = max(128, ((num_actions + 127) // 128) * 128)          # lane-dense out
    w4p = jnp.zeros((hid, na_pad), jnp.float32).at[:, :num_actions].set(
        params["w4"]).astype(mm_dtype)
    b4p = jnp.zeros((1, na_pad), jnp.float32).at[0, :num_actions].set(
        params["b4"].astype(jnp.float32))

    operands = (cols1, w1_bd, b1t, w2s, b2, w3c, b3, w4p, b4p)

    # Weights are full resident blocks (same block index every grid step);
    # only cols1 / out are tiled over the batch-tile grid axis.
    in_specs = [
        pl.BlockSpec((rows_tile, n_taps * k_conv1), lambda i: (i, 0)),
        pl.BlockSpec(w1_bd.shape, lambda i: (0, 0)),
        pl.BlockSpec(b1t.shape, lambda i: (0, 0)),
        pl.BlockSpec(w2s.shape, lambda i: (0, 0)),
        pl.BlockSpec(b2.shape, lambda i: (0, 0)),
        pl.BlockSpec(w3c.shape, lambda i: (0, 0)),
        pl.BlockSpec(b3.shape, lambda i: (0, 0)),
        pl.BlockSpec(w4p.shape, lambda i: (0, 0)),
        pl.BlockSpec(b4p.shape, lambda i: (0, 0)),
    ]
    out_spec = pl.BlockSpec((tb, na_pad), lambda i: (i, 0))

    flops = num_tiles * (
        2 * rows_tile * (n_taps * k_conv1) * (n_taps * oc1)   # conv1 (block-diag)
        + 2 * rows_tile * (n_taps * oc1) * oc2                # conv2
        + 2 * tb * (n_spatial * oc2) * hid                    # fc3
        + 2 * tb * hid * na_pad)                              # fc4
    bytes_accessed = sum(int(a.size) * a.dtype.itemsize for a in operands) \
        + n_bp * na_pad * 4

    out = pl.pallas_call(
        functools.partial(_dqn_fused_kernel, tb=tb, n_spatial=n_spatial,
                          mm_dtype=mm_dtype),
        grid=(num_tiles,),
        out_shape=jax.ShapeDtypeStruct((n_bp, na_pad), jnp.float32),
        in_specs=in_specs,
        out_specs=out_spec,
        compiler_params=pltpu.CompilerParams(
            dimension_semantics=("parallel",),        # v7x: shard tiles across TCs
            vmem_limit_bytes=32 * 1024 * 1024),
        cost_estimate=pl.CostEstimate(flops=flops, transcendentals=0,
                                      bytes_accessed=bytes_accessed),
    )(*operands)
    return out[:n, :num_actions]


# ----------------------------------------------------------------------------
# Parameter construction (deterministic, PyTorch-default-style uniform init).
# ----------------------------------------------------------------------------
def _uniform(key, shape, fan_in):
    bound = 1.0 / jnp.sqrt(jnp.float32(fan_in))
    return jax.random.uniform(key, shape, jnp.float32, -bound, bound)


def init_dqn_params(key, in_channels, in_h, in_w, num_actions):
    ks = jax.random.split(key, 8)
    # conv1: Conv2d(C, 32, kernel_size=8, stride=4)
    w1 = _uniform(ks[0], (32, in_channels, 8, 8), in_channels * 8 * 8)
    b1 = _uniform(ks[1], (32,), in_channels * 8 * 8)
    # conv2: Conv2d(32, 64, kernel_size=2, stride=2)
    w2 = _uniform(ks[2], (64, 32, 2, 2), 32 * 2 * 2)
    b2 = _uniform(ks[3], (64,), 32 * 2 * 2)
    # flatten dim after conv1 -> conv2 (what forward() actually produces)
    oh1 = (in_h - 8) // 4 + 1
    ow1 = (in_w - 8) // 4 + 1
    oh2 = (oh1 - 2) // 2 + 1
    ow2 = (ow1 - 2) // 2 + 1
    flat = 64 * oh2 * ow2
    # fc3: Linear(flat, 512)
    w3 = _uniform(ks[4], (flat, 512), flat)
    b3 = _uniform(ks[5], (512,), flat)
    # fc4: intended Linear(512, num_actions)
    w4 = _uniform(ks[6], (512, num_actions), 512)
    b4 = _uniform(ks[7], (num_actions,), 512)
    return dict(w1=w1, b1=b1, w2=w2, b2=b2, w3=w3, b3=b3, w4=w4, b4=b4)


# ----------------------------------------------------------------------------
# Pure-JAX f32 reference for validation.
# ----------------------------------------------------------------------------
def dqn_forward_ref(params, x):
    dn = ("NCHW", "OIHW", "NCHW")
    h = lax.conv_general_dilated(x, params["w1"], (4, 4), "VALID",
                                 dimension_numbers=dn)
    h = jnp.maximum(h + params["b1"][None, :, None, None], 0.0)
    h = lax.conv_general_dilated(h, params["w2"], (2, 2), "VALID",
                                 dimension_numbers=dn)
    h = jnp.maximum(h + params["b2"][None, :, None, None], 0.0)
    h = h.reshape(x.shape[0], -1)
    h = jnp.maximum(h @ params["w3"] + params["b3"], 0.0)
    return h @ params["w4"] + params["b4"]


if __name__ == "__main__":
    num_actions = 4
    N, C, H, W = 2, 4, 32, 32           # small NCHW input

    key = jax.random.PRNGKey(0)
    k_param, k_x = jax.random.split(key)
    params = init_dqn_params(k_param, C, H, W, num_actions)
    x = jax.random.normal(k_x, (N, C, H, W), jnp.float32)

    out = jax.jit(dqn_forward_pallas)(params, x)
    out = jax.block_until_ready(out)

    ref = dqn_forward_ref(params, x)
    assert out.shape == (N, num_actions), out.shape
    # bf16 matmul operands (f32 accumulate / f32 epilogue) -> loosened tolerance
    # vs. the pure-f32 reference.
    max_err = float(jnp.max(jnp.abs(out - ref)))
    assert jnp.allclose(out, ref, rtol=3e-2, atol=3e-2), max_err
    print("KERNEL_OK")
</pallas_src>

<mosaic_0001>
module attributes {stable_mosaic.version = 11 : i64} {
  func.func @_dqn_fused_kernel(%arg0: i32, %arg1: memref<72x1024xbf16, #tpu.memory_space<vmem>>, %arg2: memref<1024x128xbf16, #tpu.memory_space<vmem>>, %arg3: memref<1x128xf32, #tpu.memory_space<vmem>>, %arg4: memref<128x64xbf16, #tpu.memory_space<vmem>>, %arg5: memref<1x64xf32, #tpu.memory_space<vmem>>, %arg6: memref<576x512xbf16, #tpu.memory_space<vmem>>, %arg7: memref<1x512xf32, #tpu.memory_space<vmem>>, %arg8: memref<512x128xbf16, #tpu.memory_space<vmem>>, %arg9: memref<1x128xf32, #tpu.memory_space<vmem>>, %arg10: memref<8x128xf32, #tpu.memory_space<vmem>>) attributes {dimension_semantics = [#tpu.dimension_semantics<parallel>], iteration_bounds = array<i64: 1>, scalar_prefetch = 0 : i64, scratch_operands = 0 : i64, tpu.core_type = #tpu.core_type<tc>, window_params = [{transform_indices = @transform_0, window_bounds = array<i64: 72, 1024>}, {pipeline_mode = #tpu.pipeline_mode<synchronous>, transform_indices = @transform_1, window_bounds = array<i64: 1024, 128>}, {pipeline_mode = #tpu.pipeline_mode<synchronous>, transform_indices = @transform_2, window_bounds = array<i64: 1, 128>}, {pipeline_mode = #tpu.pipeline_mode<synchronous>, transform_indices = @transform_3, window_bounds = array<i64: 128, 64>}, {pipeline_mode = #tpu.pipeline_mode<synchronous>, transform_indices = @transform_4, window_bounds = array<i64: 1, 64>}, {pipeline_mode = #tpu.pipeline_mode<synchronous>, transform_indices = @transform_5, window_bounds = array<i64: 576, 512>}, {pipeline_mode = #tpu.pipeline_mode<synchronous>, transform_indices = @transform_6, window_bounds = array<i64: 1, 512>}, {pipeline_mode = #tpu.pipeline_mode<synchronous>, transform_indices = @transform_7, window_bounds = array<i64: 512, 128>}, {pipeline_mode = #tpu.pipeline_mode<synchronous>, transform_indices = @transform_8, window_bounds = array<i64: 1, 128>}, {transform_indices = @transform_9, window_bounds = array<i64: 8, 128>}]} {
    %c0 = arith.constant 0 : index
    %c0_0 = arith.constant 0 : index
    %0 = vector.load %arg1[%c0, %c0_0] : memref<72x1024xbf16, #tpu.memory_space<vmem>>, vector<72x1024xbf16>
    %c0_1 = arith.constant 0 : index
    %c0_2 = arith.constant 0 : index
    %1 = vector.load %arg2[%c0_1, %c0_2] : memref<1024x128xbf16, #tpu.memory_space<vmem>>, vector<1024x128xbf16>
    %cst = arith.constant dense<0.000000e+00> : vector<72x128xf32>
    %2 = tpu.matmul %0, %1, %cst {dimension_numbers = #tpu.dot_dimension_numbers<[1], [0], [0], [1], [0, 0, 1, 1], [], []>} : vector<72x1024xbf16>, vector<1024x128xbf16>, vector<72x128xf32> -> vector<72x128xf32>
    %c0_3 = arith.constant 0 : index
    %c0_4 = arith.constant 0 : index
    %3 = vector.load %arg3[%c0_3, %c0_4] : memref<1x128xf32, #tpu.memory_space<vmem>>, vector<1x128xf32>
    %4 = vector.broadcast %3 : vector<1x128xf32> to vector<72x128xf32>
    %5 = arith.addf %2, %4 : vector<72x128xf32>
    %cst_5 = arith.constant 0.000000e+00 : f32
    %6 = vector.broadcast %cst_5 : f32 to vector<72x128xf32>
    %7 = arith.maximumf %5, %6 : vector<72x128xf32>
    %8 = arith.truncf %7 : vector<72x128xf32> to vector<72x128xbf16>
    %c0_6 = arith.constant 0 : index
    %c0_7 = arith.constant 0 : index
    %9 = vector.load %arg4[%c0_6, %c0_7] : memref<128x64xbf16, #tpu.memory_space<vmem>>, vector<128x64xbf16>
    %cst_8 = arith.constant dense<0.000000e+00> : vector<72x64xf32>
    %10 = tpu.matmul %8, %9, %cst_8 {dimension_numbers = #tpu.dot_dimension_numbers<[1], [0], [0], [1], [0, 0, 1, 1], [], []>} : vector<72x128xbf16>, vector<128x64xbf16>, vector<72x64xf32> -> vector<72x64xf32>
    %c0_9 = arith.constant 0 : index
    %c0_10 = arith.constant 0 : index
    %11 = vector.load %arg5[%c0_9, %c0_10] : memref<1x64xf32, #tpu.memory_space<vmem>>, vector<1x64xf32>
    %12 = vector.broadcast %11 : vector<1x64xf32> to vector<72x64xf32>
    %13 = arith.addf %10, %12 : vector<72x64xf32>
    %cst_11 = arith.constant 0.000000e+00 : f32
    %14 = vector.broadcast %cst_11 : f32 to vector<72x64xf32>
    %15 = arith.maximumf %13, %14 : vector<72x64xf32>
    %16 = vector.extract_strided_slice %15 {offsets = [0, 0], sizes = [8, 64], strides = [1, 1]} : vector<72x64xf32> to vector<8x64xf32>
    %17 = vector.extract_strided_slice %15 {offsets = [8, 0], sizes = [8, 64], strides = [1, 1]} : vector<72x64xf32> to vector<8x64xf32>
    %18 = vector.extract_strided_slice %15 {offsets = [16, 0], sizes = [8, 64], strides = [1, 1]} : vector<72x64xf32> to vector<8x64xf32>
    %19 = vector.extract_strided_slice %15 {offsets = [24, 0], sizes = [8, 64], strides = [1, 1]} : vector<72x64xf32> to vector<8x64xf32>
    %20 = vector.extract_strided_slice %15 {offsets = [32, 0], sizes = [8, 64], strides = [1, 1]} : vector<72x64xf32> to vector<8x64xf32>
    %21 = vector.extract_strided_slice %15 {offsets = [40, 0], sizes = [8, 64], strides = [1, 1]} : vector<72x64xf32> to vector<8x64xf32>
    %22 = vector.extract_strided_slice %15 {offsets = [48, 0], sizes = [8, 64], strides = [1, 1]} : vector<72x64xf32> to vector<8x64xf32>
    %23 = vector.extract_strided_slice %15 {offsets = [56, 0], sizes = [8, 64], strides = [1, 1]} : vector<72x64xf32> to vector<8x64xf32>
    %24 = vector.extract_strided_slice %15 {offsets = [64, 0], sizes = [8, 64], strides = [1, 1]} : vector<72x64xf32> to vector<8x64xf32>
    %25 = tpu.concatenate %16, %17, %18, %19, %20, %21, %22, %23, %24 in 1 : vector<8x64xf32>, vector<8x64xf32>, vector<8x64xf32>, vector<8x64xf32>, vector<8x64xf32>, vector<8x64xf32>, vector<8x64xf32>, vector<8x64xf32>, vector<8x64xf32> -> vector<8x576xf32>
    %26 = arith.truncf %25 : vector<8x576xf32> to vector<8x576xbf16>
    %c0_12 = arith.constant 0 : index
    %c0_13 = arith.constant 0 : index
    %27 = vector.load %arg6[%c0_12, %c0_13] : memref<576x512xbf16, #tpu.memory_space<vmem>>, vector<576x512xbf16>
    %cst_14 = arith.constant dense<0.000000e+00> : vector<8x512xf32>
    %28 = tpu.matmul %26, %27, %cst_14 {dimension_numbers = #tpu.dot_dimension_numbers<[1], [0], [0], [1], [0, 0, 1, 1], [], []>} : vector<8x576xbf16>, vector<576x512xbf16>, vector<8x512xf32> -> vector<8x512xf32>
    %c0_15 = arith.constant 0 : index
    %c0_16 = arith.constant 0 : index
    %29 = vector.load %arg7[%c0_15, %c0_16] : memref<1x512xf32, #tpu.memory_space<vmem>>, vector<1x512xf32>
    %30 = vector.broadcast %29 : vector<1x512xf32> to vector<8x512xf32>
    %31 = arith.addf %28, %30 : vector<8x512xf32>
    %cst_17 = arith.constant 0.000000e+00 : f32
    %32 = vector.broadcast %cst_17 : f32 to vector<8x512xf32>
    %33 = arith.maximumf %31, %32 : vector<8x512xf32>
    %34 = arith.truncf %33 : vector<8x512xf32> to vector<8x512xbf16>
    %c0_18 = arith.constant 0 : index
    %c0_19 = arith.constant 0 : index
    %35 = vector.load %arg8[%c0_18, %c0_19] : memref<512x128xbf16, #tpu.memory_space<vmem>>, vector<512x128xbf16>
    %cst_20 = arith.constant dense<0.000000e+00> : vector<8x128xf32>
    %36 = tpu.matmul %34, %35, %cst_20 {dimension_numbers = #tpu.dot_dimension_numbers<[1], [0], [0], [1], [0, 0, 1, 1], [], []>} : vector<8x512xbf16>, vector<512x128xbf16>, vector<8x128xf32> -> vector<8x128xf32>
    %c0_21 = arith.constant 0 : index
    %c0_22 = arith.constant 0 : index
    %37 = vector.load %arg9[%c0_21, %c0_22] : memref<1x128xf32, #tpu.memory_space<vmem>>, vector<1x128xf32>
    %38 = vector.broadcast %37 : vector<1x128xf32> to vector<8x128xf32>
    %39 = arith.addf %36, %38 : vector<8x128xf32>
    %c0_23 = arith.constant 0 : index
    %c0_24 = arith.constant 0 : index
    %40 = vector.load %arg10[%c0_23, %c0_24] : memref<8x128xf32, #tpu.memory_space<vmem>>, vector<8x128xf32>
    tpu.vector_store %arg10[%c0_23, %c0_24], %39 {strides = array<i32>} : memref<8x128xf32, #tpu.memory_space<vmem>>, vector<8x128xf32>,
    return
  }
  func.func @transform_0(%arg0: i32) -> (i32, i32) {
    %c0_i32 = arith.constant 0 : i32
    %c0_i32_0 = arith.constant 0 : i32
    return %arg0, %c0_i32 : i32, i32
  }
  func.func @transform_1(%arg0: i32) -> (i32, i32) {
    %c0_i32 = arith.constant 0 : i32
    %c0_i32_0 = arith.constant 0 : i32
    %c0_i32_1 = arith.constant 0 : i32
    return %c0_i32, %c0_i32_0 : i32, i32
  }
  func.func @transform_2(%arg0: i32) -> (i32, i32) {
    %c0_i32 = arith.constant 0 : i32
    %c0_i32_0 = arith.constant 0 : i32
    %c0_i32_1 = arith.constant 0 : i32
    return %c0_i32, %c0_i32_0 : i32, i32
  }
  func.func @transform_3(%arg0: i32) -> (i32, i32) {
    %c0_i32 = arith.constant 0 : i32
    %c0_i32_0 = arith.constant 0 : i32
    %c0_i32_1 = arith.constant 0 : i32
    return %c0_i32, %c0_i32_0 : i32, i32
  }
  func.func @transform_4(%arg0: i32) -> (i32, i32) {
    %c0_i32 = arith.constant 0 : i32
    %c0_i32_0 = arith.constant 0 : i32
    %c0_i32_1 = arith.constant 0 : i32
    return %c0_i32, %c0_i32_0 : i32, i32
  }
  func.func @transform_5(%arg0: i32) -> (i32, i32) {
    %c0_i32 = arith.constant 0 : i32
    %c0_i32_0 = arith.constant 0 : i32
    %c0_i32_1 = arith.constant 0 : i32
    return %c0_i32, %c0_i32_0 : i32, i32
  }
  func.func @transform_6(%arg0: i32) -> (i32, i32) {
    %c0_i32 = arith.constant 0 : i32
    %c0_i32_0 = arith.constant 0 : i32
    %c0_i32_1 = arith.constant 0 : i32
    return %c0_i32, %c0_i32_0 : i32, i32
  }
  func.func @transform_7(%arg0: i32) -> (i32, i32) {
    %c0_i32 = arith.constant 0 : i32
    %c0_i32_0 = arith.constant 0 : i32
    %c0_i32_1 = arith.constant 0 : i32
    return %c0_i32, %c0_i32_0 : i32, i32
  }
  func.func @transform_8(%arg0: i32) -> (i32, i32) {
    %c0_i32 = arith.constant 0 : i32
    %c0_i32_0 = arith.constant 0 : i32
    %c0_i32_1 = arith.constant 0 : i32
    return %c0_i32, %c0_i32_0 : i32, i32
  }
  func.func @transform_9(%arg0: i32) -> (i32, i32) {
    %c0_i32 = arith.constant 0 : i32
    %c0_i32_0 = arith.constant 0 : i32
    return %arg0, %c0_i32 : i32, i32
  }
}

</mosaic_0001>

<bundles_post_ra>
// kernel: tile.8
= control target key start
LH: loop header
LB: loop body
LE: loop exit
PB: predicated region body
PF: predicated region fallthrough
CT: control target
= control target key end

     0   :  { %s22_s0 = inlined_call_operand.vmem [shape: f32[32], index: 0, kind: input, shape index: {}]   ;;  %s23_s1 = inlined_call_operand.vmem [shape: f32[4,32], index: 1, kind: output, shape index: {}]  }
   0x1   :  { %v4_v0 = vld [vmem:[%s22_s0] ss:$0 sm:$0xff] }
   0x2   :  { %5 = vst [vmem:[%s23_s1] sm:$0xf] %v4_v0 }

// kernel: tile.9
= control target key start
LH: loop header
LB: loop body
LE: loop exit
PB: predicated region body
PF: predicated region fallthrough
CT: control target
= control target key end

     0   :  { %vm7_vm0 = vcmask 261120   ;;  %s37_s8 = smov 32   ;;  %s38_s9 = smov 64   ;;  %vm13_vm1 = vcmask 1048320   ;;  %vm19_vm2 = vcmask 785920   ;;  %vm25_vm3 = vcmask 523520   ;;  %s55_s0 = inlined_call_operand.vmem [shape: f32[4,32], index: 0, kind: input, shape index: {}]   ;;  %s56_s1 = inlined_call_operand.vmem [shape: f32[1,128], index: 1, kind: output, shape index: {}]  }
   0x1   :  { %v4_v0 = vld [vmem:[%s55_s0] sm:$0xf]  ;;  %s36_s0 = smov 96  }
   0x2   :  { %5 = vst [vmem:[#allocation1] sm:$0xf] %v4_v0 }
   0x9   :  { %v10_v1 = vld [vmem:[#allocation1 + $0x3] sm:$0x1]   ;;  %v22_v2 = vld [vmem:[#allocation1 + $0x1] sm:$0x1]   ;;  %v6_v3 = vld [vmem:[#allocation1] sm:$0x1]  }
   0xa   :  { %11 = vrot.lane.b32.xlu0 %v10_v1, %s36_s0  ;;  %23 = vrot.lane.b32.xlu1 %v22_v2, %s37_s8  ;;  %v16_v4 = vld [vmem:[#allocation1 + $0x2] sm:$0x1]   ;;  %8 = vst.msk [vmem:[#allocation0] sm:$0x1] %vm7_vm0, %v6_v3  }
   0xe   :  { %17 = vrot.lane.b32.xlu0 %v16_v4, %s38_s9 }
  0x7c   :  { %v12_v5 = vpop.permute.xlu0 %11   ;;  %v24_v6 = vpop.permute.xlu1 %23  }
  0x7d   :  { %14 = vst.msk [vmem:[#allocation0] sm:$0x1] %vm13_vm1, %v12_v5  }
  0x80   :  { %v18_v7 = vpop.permute.xlu0 %17  }
  0x81   :  { %20 = vst.msk [vmem:[#allocation0] sm:$0x1] %vm19_vm2, %v18_v7  }
  0x82   :  { %26 = vst.msk [vmem:[#allocation0] sm:$0x1] %vm25_vm3, %v24_v6  }
  0x89   :  { %v30_v8 = vld [vmem:[#allocation0] sm:$0x1] }
  0x8a   :  { %32 = vst [vmem:[%s56_s1] sm:$0x1] %v30_v8 }

// kernel: dqn_forward_pallas.1
= control target key start
LH: loop header
LB: loop body
LE: loop exit
PB: predicated region body
PF: predicated region fallthrough
CT: control target
= control target key end

     0   :  { %vm3680_vm0 = vmmov 0   ;;  %s3681_s19 = smov 64   ;;  %vm1246_vm1 = vcmask 523264   ;;  %s4672_s1 = inlined_call_operand.vmem [shape: bf16[1024,128], index: 1, kind: input, shape index: {}]   ;;  %s4673_s0 = inlined_call_operand.vmem [shape: bf16[72,1024], index: 0, kind: input, shape index: {}]   ;;  %s4674_s3 = inlined_call_operand.vmem [shape: bf16[128,64], index: 3, kind: input, shape index: {}]   ;;  %s4675_s2 = inlined_call_operand.vmem [shape: f32[1,128], index: 2, kind: input, shape index: {}]   ;;  %s4676_s5 = inlined_call_operand.vmem [shape: bf16[576,512], index: 5, kind: input, shape index: {}]   ;;  %s4677_s4 = inlined_call_operand.vmem [shape: f32[1,64], index: 4, kind: input, shape index: {}]   ;;  %s4678_s7 = inlined_call_operand.vmem [shape: bf16[512,128], index: 7, kind: input, shape index: {}]   ;;  %s4679_s6 = inlined_call_operand.vmem [shape: f32[1,512], index: 6, kind: input, shape index: {}]   ;;  %s4680_s8 = inlined_call_operand.vmem [shape: f32[1,128], index: 8, kind: input, shape index: {}]   ;;  %s4681_s9 = inlined_call_operand.vmem [shape: f32[8,128], index: 9, kind: output, shape index: {}]  }
   0x1   :  { %v3351_v0 = vld [vmem:[%s4672_s1 + $0x40] sm:$0xff]   ;;  %v3355_v4 = vld [vmem:[%s4672_s1 + $0x48] sm:$0xff]   ;;  %v3359_v8 = vld [vmem:[%s4672_s1 + $0x50] sm:$0xff]  }
   0x2   :  { %v3352_v1 = vld [vmem:[%s4672_s1 + $0xc0] sm:$0xff]   ;;  %3040 = vmatprep.subr.bf16.mxu0 %v3351_v0  ;;  %v3356_v5 = vld [vmem:[%s4672_s1 + $0xc8] sm:$0xff]   ;;  %v3360_v9 = vld [vmem:[%s4672_s1 + $0xd0] sm:$0xff]  }
   0x3   :  { %v3353_v2 = vld [vmem:[%s4672_s1] sm:$0xff]   ;;  %3086 = vmatprep.subr.bf16.mxu1 %v3352_v1  ;;  %v3357_v6 = vld [vmem:[%s4672_s1 + $0x8] sm:$0xff]   ;;  %v3361_v10 = vld [vmem:[%s4672_s1 + $0x10] sm:$0xff]  }
   0x4   :  { %v3354_v3 = vld [vmem:[%s4672_s1 + $0x80] sm:$0xff]   ;;  %3041 = vmatpush3.bf16.msra.mxu0 %v3353_v2  ;;  %v3358_v7 = vld [vmem:[%s4672_s1 + $0x88] sm:$0xff]   ;;  %v3362_v11 = vld [vmem:[%s4672_s1 + $0x90] sm:$0xff]  }
   0x5   :  { %3087 = vmatpush3.bf16.msra.mxu1 %v3354_v3  ;;  %3042 = vmatprep.subr.bf16.mxu0 %v3355_v4  ;;  %v3363_v12 = vld [vmem:[%s4672_s1 + $0x58] sm:$0xff]   ;;  %v3367_v16 = vld [vmem:[%s4672_s1 + $0x60] sm:$0xff]   ;;  %v3371_v20 = vld [vmem:[%s4672_s1 + $0x68] sm:$0xff]  }
   0x6   :  { %3088 = vmatprep.subr.bf16.mxu1 %v3356_v5  ;;  %v3364_v13 = vld [vmem:[%s4672_s1 + $0xd8] sm:$0xff]   ;;  %v3368_v17 = vld [vmem:[%s4672_s1 + $0xe0] sm:$0xff]   ;;  %v3372_v21 = vld [vmem:[%s4672_s1 + $0xe8] sm:$0xff]  }
   0x7   :  { %v3365_v14 = vld [vmem:[%s4672_s1 + $0x18] sm:$0xff]   ;;  %v3369_v18 = vld [vmem:[%s4672_s1 + $0x20] sm:$0xff]   ;;  %v3373_v22 = vld [vmem:[%s4672_s1 + $0x28] sm:$0xff]  }
   0x8   :  { %3043 = vmatpush3.bf16.msra.mxu0 %v3357_v6  ;;  %v3366_v15 = vld [vmem:[%s4672_s1 + $0x98] sm:$0xff]   ;;  %v3370_v19 = vld [vmem:[%s4672_s1 + $0xa0] sm:$0xff]   ;;  %v3374_v23 = vld [vmem:[%s4672_s1 + $0xa8] sm:$0xff]  }
   0x9   :  { %3089 = vmatpush3.bf16.msra.mxu1 %v3358_v7  ;;  %3044 = vmatprep.subr.bf16.mxu0 %v3359_v8  ;;  %v3375_v24 = vld [vmem:[%s4672_s1 + $0x70] sm:$0xff]   ;;  %v3379_v28 = vld [vmem:[%s4672_s1 + $0x78] sm:$0xff]   ;;  %v33_v32 = vld [vmem:[%s4673_s0] sm:$0xff] }
   0xa   :  { %3090 = vmatprep.subr.bf16.mxu1 %v3360_v9  ;;  %v3376_v25 = vld [vmem:[%s4672_s1 + $0xf0] sm:$0xff]   ;;  %v3380_v29 = vld [vmem:[%s4672_s1 + $0xf8] sm:$0xff]   ;;  %v37_v33 = vld [vmem:[%s4673_s0 + $0x20] sm:$0xff] }
   0xb   :  { %v3377_v26 = vld [vmem:[%s4672_s1 + $0x30] sm:$0xff]   ;;  %v3381_v30 = vld [vmem:[%s4672_s1 + $0x38] sm:$0xff]   ;;  %v34_v34 = vld [vmem:[%s4673_s0 + $0x8] sm:$0xff]  ;;  %v2748_v35 = vcombine.low %v33_v32, %v37_v33  ;;  %v2749_v36 = vcombine.high %v33_v32, %v37_v33 }
   0xc   :  { %3045 = vmatpush3.bf16.msra.mxu0 %v3361_v10  ;;  %v3378_v27 = vld [vmem:[%s4672_s1 + $0xb0] sm:$0xff]   ;;  %v3382_v31 = vld [vmem:[%s4672_s1 + $0xb8] sm:$0xff]   ;;  %v38_v37 = vld [vmem:[%s4673_s0 + $0x28] sm:$0xff] }
   0xd   :  { %3091 = vmatpush3.bf16.msra.mxu1 %v3362_v11  ;;  %3046 = vmatprep.subr.bf16.mxu0 %v3363_v12  ;;  %v2750_v38 = vcombine.low %v34_v34, %v38_v37  ;;  %v2751_v39 = vcombine.high %v34_v34, %v38_v37  ;;  %v3383_v40 = vld [vmem:[%s4672_s1 + $0x140] sm:$0xff]   ;;  %v3387_v44 = vld [vmem:[%s4672_s1 + $0x148] sm:$0xff]   ;;  %v3391_v56 = vld [vmem:[%s4672_s1 + $0x150] sm:$0xff]  }
   0xe   :  { %3092 = vmatprep.subr.bf16.mxu1 %v3364_v13  ;;  %808 = vmatprep.mubr.bf16.mxu0 %v2749_v36  ;;  %v3384_v41 = vld [vmem:[%s4672_s1 + $0x100] sm:$0xff]   ;;  %v3388_v45 = vld [vmem:[%s4672_s1 + $0x108] sm:$0xff]   ;;  %v3392_v57 = vld [vmem:[%s4672_s1 + $0x110] sm:$0xff]  }
   0xf   :  { %880 = vmatprep.mubr.bf16.mxu1 %v2751_v39  ;;  %v3385_v42 = vld [vmem:[%s4672_s1 + $0x1c0] sm:$0xff]   ;;  %v42_v49 = vld [vmem:[%s4673_s0 + $0x48] sm:$0xff]  ;;  %v3393_v58 = vld [vmem:[%s4672_s1 + $0x1d0] sm:$0xff]  }
  0x10   :  { %3047 = vmatpush3.bf16.msra.mxu0 %v3365_v14  ;;  %v3386_v43 = vld [vmem:[%s4672_s1 + $0x180] sm:$0xff]   ;;  %v46_v50 = vld [vmem:[%s4673_s0 + $0x68] sm:$0xff]  ;;  %v3394_v59 = vld [vmem:[%s4672_s1 + $0x190] sm:$0xff]  }
  0x11   :  { %3093 = vmatpush3.bf16.msra.mxu1 %v3366_v15  ;;  %3048 = vmatprep.subr.bf16.mxu0 %v3367_v16  ;;  %v41_v46 = vld [vmem:[%s4673_s0 + $0x40] sm:$0xff]  ;;  %v2759_v52 = vcombine.high %v42_v49, %v46_v50  ;;  %v3389_v53 = vld [vmem:[%s4672_s1 + $0x1c8] sm:$0xff]   ;;  %v2758_v54 = vcombine.low %v42_v49, %v46_v50  ;;  %v3395_v2 = vld [vmem:[%s4672_s1 + $0x158] sm:$0xff]  }
  0x12   :  { %3094 = vmatprep.subr.bf16.mxu1 %v3368_v17  ;;  %v45_v47 = vld [vmem:[%s4673_s0 + $0x60] sm:$0xff]  ;;  %v3390_v55 = vld [vmem:[%s4672_s1 + $0x188] sm:$0xff]   ;;  %v3396_v5 = vld [vmem:[%s4672_s1 + $0x118] sm:$0xff]  }
  0x13   :  { %v2757_v48 = vcombine.high %v41_v46, %v45_v47  ;;  %v2756_v51 = vcombine.low %v41_v46, %v45_v47  ;;  %v49_v60 = vld [vmem:[%s4673_s0 + $0x80] sm:$0xff]  ;;  %v50_v62 = vld [vmem:[%s4673_s0 + $0x88] sm:$0xff]  ;;  %v3397_v6 = vld [vmem:[%s4672_s1 + $0x1d8] sm:$0xff]  }
  0x14   :  { %3049 = vmatpush3.bf16.msra.mxu0 %v3369_v18  ;;  %v53_v61 = vld [vmem:[%s4673_s0 + $0xa0] sm:$0xff]  ;;  %v54_v63 = vld [vmem:[%s4673_s0 + $0xa8] sm:$0xff]  ;;  %v3398_v7 = vld [vmem:[%s4672_s1 + $0x198] sm:$0xff]  }
  0x15   :  { %3095 = vmatpush3.bf16.msra.mxu1 %v3370_v19  ;;  %3050 = vmatprep.subr.bf16.mxu0 %v3371_v20  ;;  %v2765_v0 = vcombine.high %v49_v60, %v53_v61  ;;  %v2767_v1 = vcombine.high %v50_v62, %v54_v63  ;;  %v2764_v3 = vcombine.low %v49_v60, %v53_v61  ;;  %v3399_v8 = vld [vmem:[%s4672_s1 + $0x160] sm:$0xff]   ;;  %v58_v13 = vld [vmem:[%s4673_s0 + $0xc8] sm:$0xff]  ;;  %v3414_v33 = vld [vmem:[%s4672_s1 + $0x1b0] sm:$0xff]  }
  0x16   :  { %3096 = vmatprep.subr.bf16.mxu1 %v3372_v21  ;;  %v2766_v4 = vcombine.low %v50_v62, %v54_v63  ;;  %v3400_v9 = vld [vmem:[%s4672_s1 + $0x120] sm:$0xff]   ;;  %v62_v15 = vld [vmem:[%s4673_s0 + $0xe8] sm:$0xff]  ;;  %v3415_v34 = vld [vmem:[%s4672_s1 + $0x178] sm:$0xff]  }
  0x17   :  { %v3401_v10 = vld [vmem:[%s4672_s1 + $0x1e0] sm:$0xff]   ;;  %v2775_v17 = vcombine.high %v58_v13, %v62_v15  ;;  %v2774_v19 = vcombine.low %v58_v13, %v62_v15  ;;  %v3403_v20 = vld [vmem:[%s4672_s1 + $0x168] sm:$0xff]   ;;  %v3417_v36 = vld [vmem:[%s4672_s1 + $0x1f8] sm:$0xff]  }
  0x18   :  { %3051 = vmatpush3.bf16.msra.mxu0 %v3373_v22  ;;  %v57_v11 = vld [vmem:[%s4673_s0 + $0xc0] sm:$0xff]  ;;  %v3404_v21 = vld [vmem:[%s4672_s1 + $0x128] sm:$0xff]   ;;  %v3418_v37 = vld [vmem:[%s4672_s1 + $0x1b8] sm:$0xff]  }
  0x19   :  { %3097 = vmatpush3.bf16.msra.mxu1 %v3374_v23  ;;  %3052 = vmatprep.subr.bf16.mxu0 %v3375_v24  ;;  %v61_v12 = vld [vmem:[%s4673_s0 + $0xe0] sm:$0xff]  ;;  %v3405_v22 = vld [vmem:[%s4672_s1 + $0x1e8] sm:$0xff]   ;;  %v3407_v24 = vld [vmem:[%s4672_s1 + $0x170] sm:$0xff]  }
  0x1a   :  { %3098 = vmatprep.subr.bf16.mxu1 %v3376_v25  ;;  %v2773_v14 = vcombine.high %v57_v11, %v61_v12  ;;  %v2772_v16 = vcombine.low %v57_v11, %v61_v12  ;;  %v3402_v18 = vld [vmem:[%s4672_s1 + $0x1a0] sm:$0xff]   ;;  %v3406_v23 = vld [vmem:[%s4672_s1 + $0x1a8] sm:$0xff]   ;;  %v39_v39 = vld [vmem:[%s4673_s0 + $0x30] sm:$0xff]  ;;  %v3679_v12 = vmov 0.0  }
  0x1b   :  { %v65_v25 = vld [vmem:[%s4673_s0 + $0x100] sm:$0xff]  ;;  %v44_v47 = vld [vmem:[%s4673_s0 + $0x58] sm:$0xff]  ;;  %v59_v60 = vld [vmem:[%s4673_s0 + $0xd0] sm:$0xff] }
  0x1c   :  { %3053 = vmatpush3.bf16.msra.mxu0 %v3377_v26  ;;  %v66_v26 = vld [vmem:[%s4673_s0 + $0x108] sm:$0xff]  ;;  %v63_v61 = vld [vmem:[%s4673_s0 + $0xf0] sm:$0xff]  ;;  %v60_v62 = vld [vmem:[%s4673_s0 + $0xd8] sm:$0xff] }
  0x1d   :  { %3099 = vmatpush3.bf16.msra.mxu1 %v3378_v27  ;;  %3054 = vmatprep.subr.bf16.mxu0 %v3379_v28  ;;  %v2781_v27 = vcombine.high %v65_v25, %v65_v25  ;;  %v2783_v28 = vcombine.high %v66_v26, %v66_v26  ;;  %v2782_v32 = vcombine.low %v66_v26, %v66_v26  ;;  %v64_v63 = vld [vmem:[%s4673_s0 + $0xf8] sm:$0xff]  ;;  %v3423_v13 = vld [vmem:[%s4674_s3] sm:$0xff]   ;;  %v3425_v15 = vld [vmem:[%s4674_s3 + $0x10] sm:$0xff]  }
  0x1e   :  { %3100 = vmatprep.subr.bf16.mxu1 %v3380_v29  ;;  %v3410_v29 = vld [vmem:[%s4672_s1 + $0x130] sm:$0xff]  }
  0x20   :  { %3055 = vmatpush3.bf16.msra.mxu0 %v3381_v30  ;;  %v2780_v30 = vcombine.low %v65_v25, %v65_v25 }
  0x21   :  { %3101 = vmatpush3.bf16.msra.mxu1 %v3382_v31  ;;  %3132 = vmatprep.subr.bf16.mxu0 %v3383_v40  ;;  %v3413_v31 = vld [vmem:[%s4672_s1 + $0x1f0] sm:$0xff]   ;;  %v36_v40 = vld [vmem:[%s4673_s0 + $0x18] sm:$0xff] }
  0x22   :  { %3178 = vmatprep.subr.bf16.mxu1 %v3385_v42  ;;  %v40_v42 = vld [vmem:[%s4673_s0 + $0x38] sm:$0xff] }
  0x23   :  { %809 = vmatmul.mubr.bf16.vlgmr.msra.gmra.mrb[0].mxu0 %v2748_v35  ;;  %v3416_v35 = vld [vmem:[%s4672_s1 + $0x138] sm:$0xff]   ;;  %v2755_v46 = vcombine.high %v36_v40, %v40_v42  ;;  %v2754_v49 = vcombine.low %v36_v40, %v40_v42 }
  0x24   :  { %881 = vmatmul.mubr.bf16.vlgmr.msra.gmra.mrb[0].mxu1 %v2750_v38  ;;  %3133 = vmatpush3.bf16.msra.mxu0 %v3384_v41  ;;  %v35_v38 = vld [vmem:[%s4673_s0 + $0x10] sm:$0xff] }
  0x25   :  { %3179 = vmatpush3.bf16.msra.mxu1 %v3386_v43  ;;  %3134 = vmatprep.subr.bf16.mxu0 %v3387_v44  ;;  %v2753_v41 = vcombine.high %v35_v38, %v39_v39  ;;  %v43_v43 = vld [vmem:[%s4673_s0 + $0x50] sm:$0xff] }
  0x26   :  { %816 = vmatprep.mubr.bf16.mxu0 %v2757_v48  ;;  %888 = vmatprep.mubr.bf16.mxu1 %v2759_v52  ;;  %v47_v44 = vld [vmem:[%s4673_s0 + $0x70] sm:$0xff]  ;;  %v48_v48 = vld [vmem:[%s4673_s0 + $0x78] sm:$0xff] }
  0x27   :  { %3180 = vmatprep.subr.bf16.mxu1 %v3389_v53  ;;  %v2761_v50 = vcombine.high %v43_v43, %v47_v44  ;;  %v51_v52 = vld [vmem:[%s4673_s0 + $0x90] sm:$0xff] }
  0x28   :  { %3135 = vmatpush3.bf16.msra.mxu0 %v3388_v45  ;;  %v2752_v45 = vcombine.low %v35_v38, %v39_v39  ;;  %v55_v53 = vld [vmem:[%s4673_s0 + $0xb0] sm:$0xff] }
  0x29   :  { %3181 = vmatpush3.bf16.msra.mxu1 %v3390_v55  ;;  %3136 = vmatprep.subr.bf16.mxu0 %v3391_v56  ;;  %v56_v55 = vld [vmem:[%s4673_s0 + $0xb8] sm:$0xff]  ;;  %v2760_v56 = vcombine.low %v43_v43, %v47_v44 }
  0x2a   :  { %3182 = vmatprep.subr.bf16.mxu1 %v3393_v58  ;;  %v2769_v58 = vcombine.high %v51_v52, %v55_v53 }
  0x2b   :  { %817 = vmatmul.mubr.bf16.gmra.mrb[4].mxu0 %v2756_v51  ;;  %v2763_v51 = vcombine.high %v44_v47, %v48_v48 }
  0x2c   :  { %889 = vmatmul.mubr.bf16.gmra.mrb[4].mxu1 %v2758_v54  ;;  %3137 = vmatpush3.bf16.msra.mxu0 %v3392_v57  ;;  %v52_v54 = vld [vmem:[%s4673_s0 + $0x98] sm:$0xff]  ;;  %v2762_v57 = vcombine.low %v44_v47, %v48_v48 }
  0x2d   :  { %3183 = vmatpush3.bf16.msra.mxu1 %v3394_v59  ;;  %824 = vmatprep.mubr.bf16.mxu0 %v2765_v0  ;;  %v2771_v59 = vcombine.high %v52_v54, %v56_v55  ;;  %v2768_v0 = vcombine.low %v51_v52, %v55_v53 }
  0x2e   :  { %896 = vmatprep.mubr.bf16.mxu1 %v2767_v1  ;;  %3138 = vmatprep.subr.bf16.mxu0 %v3395_v2  ;;  %v2770_v1 = vcombine.low %v52_v54, %v56_v55  ;;  %v2777_v2 = vcombine.high %v59_v60, %v63_v61 }
  0x2f   :  { %3184 = vmatprep.subr.bf16.mxu1 %v3397_v6  ;;  %v2776_v6 = vcombine.low %v59_v60, %v63_v61 }
  0x30   :  { %3139 = vmatpush3.bf16.msra.mxu0 %v3396_v5  ;;  %v68_v5 = vld [vmem:[%s4673_s0 + $0x118] sm:$0xff] }
  0x31   :  { %3185 = vmatpush3.bf16.msra.mxu1 %v3398_v7  ;;  %3140 = vmatprep.subr.bf16.mxu0 %v3399_v8  ;;  %v2778_v7 = vcombine.low %v60_v62, %v64_v63  ;;  %v2786_v11 = vcombine.low %v68_v5, %v68_v5 }
  0x32   :  { %3186 = vmatprep.subr.bf16.mxu1 %v3401_v10 }
  0x33   :  { %825 = vmatmul.mubr.bf16.gmra.mrb[8].mxu0 %v2764_v3  ;;  %v2779_v3 = vcombine.high %v60_v62, %v64_v63 }
  0x34   :  { %897 = vmatmul.mubr.bf16.gmra.mrb[8].mxu1 %v2766_v4  ;;  %3141 = vmatpush3.bf16.msra.mxu0 %v3400_v9  ;;  %v67_v4 = vld [vmem:[%s4673_s0 + $0x110] sm:$0xff]  ;;  %v2787_v9 = vcombine.high %v68_v5, %v68_v5 }
  0x35   :  { %832 = vmatprep.mubr.bf16.mxu0 %v2773_v14  ;;  %904 = vmatprep.mubr.bf16.mxu1 %v2775_v17  ;;  %v2785_v8 = vcombine.high %v67_v4, %v67_v4  ;;  %v2784_v10 = vcombine.low %v67_v4, %v67_v4  ;;  %v3424_v14 = vld [vmem:[%s4674_s3 + $0x8] sm:$0xff]   ;;  %v3427_v17 = vld [vmem:[%s4674_s3 + $0x20] sm:$0xff]  }
  0x36   :  { %3187 = vmatpush3.bf16.msra.mxu1 %v3402_v18  ;;  %3142 = vmatprep.subr.bf16.mxu0 %v3403_v20  ;;  %v3428_v18 = vld [vmem:[%s4674_s3 + $0x28] sm:$0xff]   ;;  %v3430_v20 = vld [vmem:[%s4674_s3 + $0x38] sm:$0xff]  }
  0x37   :  { %3188 = vmatprep.subr.bf16.mxu1 %v3405_v22 }
  0x38   :  { %3143 = vmatpush3.bf16.msra.mxu0 %v3404_v21 }
  0x39   :  { %3144 = vmatprep.subr.bf16.mxu0 %v3407_v24 }
  0x3a   :  { %3189 = vmatpush3.bf16.msra.mxu1 %v3406_v23  ;;  %v4070_v23 = vld [vmem:[%s4675_s2] ss:$0 sm:$0xff] }
  0x3b   :  { %833 = vmatmul.mubr.bf16.gmra.mrb[12].mxu0 %v2772_v16  ;;  %3190 = vmatprep.subr.bf16.mxu1 %v3413_v31  ;;  %v3426_v16 = vld [vmem:[%s4674_s3 + $0x18] sm:$0xff]  }
  0x3c   :  { %905 = vmatmul.mubr.bf16.gmra.mrb[12].mxu1 %v2774_v19  ;;  %840 = vmatprep.mubr.bf16.mxu0 %v2781_v27  ;;  %v3429_v19 = vld [vmem:[%s4674_s3 + $0x30] sm:$0xff]  }
  0x3d   :  { %912 = vmatprep.mubr.bf16.mxu1 %v2783_v28  ;;  %3145 = vmatpush3.bf16.msra.mxu0 %v3410_v29 }
  0x3e   :  { %3191 = vmatpush3.bf16.msra.mxu1 %v3414_v33  ;;  %3146 = vmatprep.subr.bf16.mxu0 %v3415_v34 }
  0x3f   :  { %3192 = vmatprep.subr.bf16.mxu1 %v3417_v36 }
  0x41   :  { %3147 = vmatpush3.bf16.msra.mxu0 %v3416_v35 }
  0x42   :  { %3193 = vmatpush3.bf16.msra.mxu1 %v3418_v37  ;;  %3281 = vmatprep.subr.bf16.mxu0 %v3679_v12 }
  0x43   :  { %841 = vmatmul.mubr.bf16.gmra.mrb[16].mxu0 %v2780_v30 }
  0x44   :  { %913 = vmatmul.mubr.bf16.gmra.mrb[16].mxu1 %v2782_v32  ;;  %952 = vmatprep.mubr.bf16.mxu0 %v2753_v41 }
  0x45   :  { %1024 = vmatprep.mubr.bf16.mxu1 %v2755_v46 }
  0x4b   :  { %953 = vmatmul.mubr.bf16.vlgmr.msra.gmra.mrb[20].mxu0 %v2752_v45 }
  0x4c   :  { %1025 = vmatmul.mubr.bf16.vlgmr.msra.gmra.mrb[20].mxu1 %v2754_v49  ;;  %960 = vmatprep.mubr.bf16.mxu0 %v2761_v50 }
  0x4d   :  { %1032 = vmatprep.mubr.bf16.mxu1 %v2763_v51  ;;  %3282 = vmatpush3.bf16.msra.mxu0 %v3423_v13 }
  0x4e   :  { %3283 = vmatprep.subr.bf16.mxu0 %v3679_v12 }
  0x51   :  { %3284 = vmatpush3.bf16.msra.mxu0 %v3424_v14 }
  0x52   :  { %3285 = vmatprep.subr.bf16.mxu0 %v3679_v12 }
  0x53   :  { %961 = vmatmul.mubr.bf16.gmra.mrb[24].mxu0 %v2760_v56 }
  0x54   :  { %1033 = vmatmul.mubr.bf16.gmra.mrb[24].mxu1 %v2762_v57  ;;  %968 = vmatprep.mubr.bf16.mxu0 %v2769_v58 }
  0x55   :  { %1040 = vmatprep.mubr.bf16.mxu1 %v2771_v59  ;;  %3286 = vmatpush3.bf16.msra.mxu0 %v3425_v15 }
  0x56   :  { %3287 = vmatprep.subr.bf16.mxu0 %v3679_v12 }
  0x59   :  { %3288 = vmatpush3.bf16.msra.mxu0 %v3426_v16 }
  0x5a   :  { %3289 = vmatprep.subr.bf16.mxu0 %v3679_v12 }
  0x5b   :  { %969 = vmatmul.mubr.bf16.gmra.mrb[28].mxu0 %v2768_v0 }
  0x5c   :  { %1041 = vmatmul.mubr.bf16.gmra.mrb[28].mxu1 %v2770_v1  ;;  %976 = vmatprep.mubr.bf16.mxu0 %v2777_v2 }
  0x5d   :  { %1048 = vmatprep.mubr.bf16.mxu1 %v2779_v3  ;;  %3290 = vmatpush3.bf16.msra.mxu0 %v3427_v17 }
  0x5e   :  { %3291 = vmatprep.subr.bf16.mxu0 %v3679_v12 }
  0x61   :  { %3292 = vmatpush3.bf16.msra.mxu0 %v3428_v18 }
  0x62   :  { %3293 = vmatprep.subr.bf16.mxu0 %v3679_v12 }
  0x63   :  { %977 = vmatmul.mubr.bf16.gmra.mrb[32].mxu0 %v2776_v6 }
  0x64   :  { %1049 = vmatmul.mubr.bf16.gmra.mrb[32].mxu1 %v2778_v7  ;;  %984 = vmatprep.mubr.bf16.mxu0 %v2785_v8 }
  0x65   :  { %1056 = vmatprep.mubr.bf16.mxu1 %v2787_v9  ;;  %3294 = vmatpush3.bf16.msra.mxu0 %v3429_v19 }
  0x66   :  { %3295 = vmatprep.subr.bf16.mxu0 %v3679_v12 }
  0x69   :  { %3296 = vmatpush3.bf16.msra.mxu0 %v3430_v20 }
  0x6b   :  { %985 = vmatmul.mubr.bf16.gmra.mrb[36].mxu0 %v2784_v10 }
  0x6c   :  { %1057 = vmatmul.mubr.bf16.gmra.mrb[36].mxu1 %v2786_v11  ;;  %3297 = vmatprep.mubr.msk.bf16.mxu0 %vm3680_vm0, %v3679_v12 }
  0xf6   :  { %v3056_v21 = vpop.f32.mrb[0].mxu0 }
  0xf7   :  { %v3102_v22 = vpop.f32.mrb[0].mxu1  ;;  %v3057_v24 = vpop.f32.mrb[1].mxu0 }
  0xf8   :  { %v3058_v25 = vadd.f32 %v3057_v24, %v3056_v21  ;;  %v3103_v26 = vpop.f32.mrb[1].mxu1  ;;  %v3059_v27 = vpop.f32.mrb[2].mxu0 }
  0xf9   :  { %v3104_v28 = vadd.f32 %v3103_v26, %v3102_v22  ;;  %v3105_v29 = vpop.f32.mrb[2].mxu1  ;;  %v3060_v30 = vpop.f32.mrb[3].mxu0 }
  0xfa   :  { %v811_v31 = vadd.f32 %v3058_v25, %v4070_v23  ;;  %v3061_v32 = vadd.f32 %v3060_v30, %v3059_v27  ;;  %v3106_v33 = vpop.f32.mrb[3].mxu1 }
  0xfb   :  { %v3107_v34 = vadd.f32 %v3106_v33, %v3105_v29 }
  0xfc   :  { %v4073_v35 = vadd.f32 %v3104_v28, %v811_v31  ;;  %v814_v36 = vadd.f32 %v3061_v32, %v4070_v23 }
  0xfe   :  { %v4076_v37 = vadd.f32 %v3107_v34, %v814_v36  ;;  %v3062_v38 = vpop.f32.mrb[4].mxu0 }
  0xff   :  { %v3108_v39 = vpop.f32.mrb[4].mxu1  ;;  %v3063_v40 = vpop.f32.mrb[5].mxu0 }
 0x100   :  { %v3064_v41 = vadd.f32 %v3063_v40, %v3062_v38  ;;  %v3109_v42 = vpop.f32.mrb[5].mxu1  ;;  %v3065_v43 = vpop.f32.mrb[6].mxu0 }
 0x101   :  { %v3110_v44 = vadd.f32 %v3109_v42, %v3108_v39  ;;  %v3111_v45 = vpop.f32.mrb[6].mxu1  ;;  %v3066_v46 = vpop.f32.mrb[7].mxu0 }
 0x102   :  { %v819_v47 = vadd.f32 %v3064_v41, %v4070_v23  ;;  %v3067_v48 = vadd.f32 %v3066_v46, %v3065_v43  ;;  %v3112_v49 = vpop.f32.mrb[7].mxu1 }
 0x103   :  { %v3113_v50 = vadd.f32 %v3112_v49, %v3111_v45 }
 0x104   :  { %v4079_v51 = vadd.f32 %v3110_v44, %v819_v47  ;;  %v822_v52 = vadd.f32 %v3067_v48, %v4070_v23 }
 0x106   :  { %v4082_v53 = vadd.f32 %v3113_v50, %v822_v52  ;;  %v3068_v54 = vpop.f32.mrb[8].mxu0 }
 0x107   :  { %v3114_v55 = vpop.f32.mrb[8].mxu1  ;;  %v3069_v56 = vpop.f32.mrb[9].mxu0 }
 0x108   :  { %v3070_v57 = vadd.f32 %v3069_v56, %v3068_v54  ;;  %v3115_v58 = vpop.f32.mrb[9].mxu1  ;;  %v3071_v59 = vpop.f32.mrb[10].mxu0 }
 0x109   :  { %v3116_v60 = vadd.f32 %v3115_v58, %v3114_v55  ;;  %v3117_v61 = vpop.f32.mrb[10].mxu1  ;;  %v3072_v62 = vpop.f32.mrb[11].mxu0 }
 0x10a   :  { %v827_v63 = vadd.f32 %v3070_v57, %v4070_v23  ;;  %v3073_v0 = vadd.f32 %v3072_v62, %v3071_v59  ;;  %v3118_v1 = vpop.f32.mrb[11].mxu1 }
 0x10b   :  { %v3119_v2 = vadd.f32 %v3118_v1, %v3117_v61 }
 0x10c   :  { %v4085_v3 = vadd.f32 %v3116_v60, %v827_v63  ;;  %v830_v4 = vadd.f32 %v3073_v0, %v4070_v23 }
 0x10e   :  { %v4088_v5 = vadd.f32 %v3119_v2, %v830_v4  ;;  %v3074_v6 = vpop.f32.mrb[12].mxu0 }
 0x10f   :  { %v3120_v7 = vpop.f32.mrb[12].mxu1  ;;  %v3075_v8 = vpop.f32.mrb[13].mxu0 }
 0x110   :  { %v3076_v9 = vadd.f32 %v3075_v8, %v3074_v6  ;;  %v3121_v10 = vpop.f32.mrb[13].mxu1  ;;  %v3077_v11 = vpop.f32.mrb[14].mxu0 }
 0x111   :  { %v3122_v13 = vadd.f32 %v3121_v10, %v3120_v7  ;;  %v3123_v14 = vpop.f32.mrb[14].mxu1  ;;  %v3078_v15 = vpop.f32.mrb[15].mxu0 }
 0x112   :  { %v835_v16 = vadd.f32 %v3076_v9, %v4070_v23  ;;  %v3079_v17 = vadd.f32 %v3078_v15, %v3077_v11  ;;  %v3124_v18 = vpop.f32.mrb[15].mxu1 }
 0x113   :  { %v3125_v19 = vadd.f32 %v3124_v18, %v3123_v14 }
 0x114   :  { %v4091_v20 = vadd.f32 %v3122_v13, %v835_v16  ;;  %v838_v21 = vadd.f32 %v3079_v17, %v4070_v23 }
 0x116   :  { %v4094_v22 = vadd.f32 %v3125_v19, %v838_v21  ;;  %v3080_v24 = vpop.f32.mrb[16].mxu0 }
 0x117   :  { %v3126_v25 = vpop.f32.mrb[16].mxu1  ;;  %v3081_v26 = vpop.f32.mrb[17].mxu0 }
 0x118   :  { %v3082_v27 = vadd.f32 %v3081_v26, %v3080_v24  ;;  %v3127_v28 = vpop.f32.mrb[17].mxu1  ;;  %v3083_v29 = vpop.f32.mrb[18].mxu0 }
 0x119   :  { %v3128_v30 = vadd.f32 %v3127_v28, %v3126_v25  ;;  %v3129_v31 = vpop.f32.mrb[18].mxu1  ;;  %v3084_v32 = vpop.f32.mrb[19].mxu0 }
 0x11a   :  { %v843_v33 = vadd.f32 %v3082_v27, %v4070_v23  ;;  %v3130_v34 = vpop.f32.mrb[19].mxu1 }
 0x11c   :  { %v4097_v36 = vadd.f32 %v3128_v30, %v843_v33 }
 0x11e   :  { %v3148_v38 = vpop.f32.mrb[20].mxu0 }
 0x11f   :  { %v3194_v39 = vpop.f32.mrb[20].mxu1  ;;  %v3149_v40 = vpop.f32.mrb[21].mxu0 }
 0x120   :  { %v3150_v41 = vadd.f32 %v3149_v40, %v3148_v38  ;;  %v3195_v42 = vpop.f32.mrb[21].mxu1  ;;  %v3151_v43 = vpop.f32.mrb[22].mxu0 }
 0x121   :  { %v3196_v44 = vadd.f32 %v3195_v42, %v3194_v39  ;;  %v3197_v45 = vpop.f32.mrb[22].mxu1  ;;  %v3152_v46 = vpop.f32.mrb[23].mxu0 }
 0x122   :  { %v955_v47 = vadd.f32 %v3150_v41, %v4073_v35  ;;  %v3153_v48 = vadd.f32 %v3152_v46, %v3151_v43  ;;  %v3198_v49 = vpop.f32.mrb[23].mxu1 }
 0x123   :  { %v3199_v50 = vadd.f32 %v3198_v49, %v3197_v45 }
 0x124   :  { %v1027_v52 = vadd.f32 %v3196_v44, %v955_v47  ;;  %v958_v23 = vadd.f32 %v3153_v48, %v4076_v37 }
 0x126   :  { %v1030_v54 = vadd.f32 %v3199_v50, %v958_v23  ;;  %v3154_v55 = vpop.f32.mrb[24].mxu0  ;;  %v1064_v58 = vmax.f32 %v1027_v52, 0.0 }
 0x127   :  { %v3200_v56 = vpop.f32.mrb[24].mxu1  ;;  %v3155_v57 = vpop.f32.mrb[25].mxu0 }
 0x128   :  { %v1065_v59 = vmax.f32 %v1030_v54, 0.0  ;;  %v3156_v60 = vadd.f32 %v3155_v57, %v3154_v55  ;;  %v3201_v61 = vpop.f32.mrb[25].mxu1  ;;  %v3157_v62 = vpop.f32.mrb[26].mxu0 }
 0x129   :  { %v3202_v63 = vadd.f32 %v3201_v61, %v3200_v56  ;;  %v3203_v0 = vpop.f32.mrb[26].mxu1  ;;  %v3158_v1 = vpop.f32.mrb[27].mxu0 }
 0x12a   :  { %v1073_v2 = vpack.c.bf16 %v1065_v59, %v1064_v58  ;;  %v963_v35 = vadd.f32 %v3156_v60, %v4079_v51  ;;  %v3159_v4 = vadd.f32 %v3158_v1, %v3157_v62  ;;  %v3204_v6 = vpop.f32.mrb[27].mxu1 }
 0x12b   :  { %v3205_v7 = vadd.f32 %v3204_v6, %v3203_v0  ;;  %v3436_v6 = vld [vmem:[%s4676_s5 + $0xc] ss:$16 sps:$4 sm:$0xff]  }
 0x12c   :  { %v1035_v8 = vadd.f32 %v3202_v63, %v963_v35  ;;  %v966_v37 = vadd.f32 %v3159_v4, %v4082_v53  ;;  %3298 = vmatmul.mubr.bf16.vlgmr.msra.gmra.mrb[40].mxu0 %v1073_v2  ;;  %v3431_v35 = vld [vmem:[%s4676_s5] ss:$16 sps:$4 sm:$0xff]   ;;  %v3433_v4 = vld [vmem:[%s4676_s5 + $0x4] ss:$16 sps:$4 sm:$0xff]   ;;  %2268 = vmatprep.subr.bf16.mxu0 %v3436_v6  ;;  %v3526_v6 = vld [vmem:[%s4676_s5 + $0x1ec] ss:$16 sps:$4 sm:$0xff]  }
 0x12d   :  { %3301 = vmatprep.mubr.msk.bf16.mxu0 %vm3680_vm0, %v3679_v12  ;;  %2145 = vmatprep.subr.bf16.mxu1 %v3433_v4 }
 0x12e   :  { %v1038_v9 = vadd.f32 %v3205_v7, %v966_v37  ;;  %v3160_v10 = vpop.f32.mrb[28].mxu0  ;;  %v1066_v14 = vmax.f32 %v1035_v8, 0.0  ;;  %v3439_v7 = vld [vmem:[%s4676_s5 + $0x24] ss:$16 sps:$4 sm:$0xff]   ;;  %2146 = vmatpush1.bf16.msra.mxu1 %v3431_v35  ;;  %v3440_v8 = vld [vmem:[%s4676_s5 + $0x28] ss:$16 sps:$4 sm:$0xff]  }
 0x12f   :  { %v3161_v11 = vpop.f32.mrb[29].mxu0  ;;  %v3206_v13 = vpop.f32.mrb[28].mxu1  ;;  %2147 = vmatprep.subr.bf16.mxu1 %v3439_v7  ;;  %v3442_v37 = vld [vmem:[%s4676_s5 + $0x2c] ss:$16 sps:$4 sm:$0xff]   ;;  %v3524_v7 = vld [vmem:[%s4676_s5 + $0x1e8] ss:$16 sps:$4 sm:$0xff]  }
 0x130   :  { %v1067_v15 = vmax.f32 %v1038_v9, 0.0  ;;  %v3162_v16 = vadd.f32 %v3161_v11, %v3160_v10  ;;  %v3163_v17 = vpop.f32.mrb[30].mxu0  ;;  %v3207_v18 = vpop.f32.mrb[29].mxu1  ;;  %v3445_v9 = vld [vmem:[%s4676_s5 + $0x44] ss:$16 sps:$4 sm:$0xff]  }
 0x131   :  { %v3164_v51 = vpop.f32.mrb[31].mxu0  ;;  %v3208_v19 = vadd.f32 %v3207_v18, %v3206_v13  ;;  %v3209_v21 = vpop.f32.mrb[30].mxu1  ;;  %v3443_v10 = vld [vmem:[%s4676_s5 + $0x40] ss:$16 sps:$4 sm:$0xff]   ;;  %v3448_v11 = vld [vmem:[%s4676_s5 + $0x4c] ss:$16 sps:$4 sm:$0xff]  }
 0x132   :  { %v971_v24 = vadd.f32 %v3162_v16, %v4085_v3  ;;  %v3165_v25 = vadd.f32 %v3164_v51, %v3163_v17  ;;  %v3210_v53 = vpop.f32.mrb[31].mxu1  ;;  %v1074_v26 = vpack.c.bf16 %v1067_v15, %v1066_v14  ;;  %v3446_v13 = vld [vmem:[%s4676_s5 + $0x48] ss:$16 sps:$4 sm:$0xff]   ;;  %v3451_v14 = vld [vmem:[%s4676_s5 + $0x64] ss:$16 sps:$4 sm:$0xff]  }
 0x133   :  { %v3211_v27 = vadd.f32 %v3210_v53, %v3209_v21  ;;  %v3454_v15 = vld [vmem:[%s4676_s5 + $0x6c] ss:$16 sps:$4 sm:$0xff]   ;;  %v3449_v16 = vld [vmem:[%s4676_s5 + $0x60] ss:$16 sps:$4 sm:$0xff]   ;;  %v3452_v17 = vld [vmem:[%s4676_s5 + $0x68] ss:$16 sps:$4 sm:$0xff]  }
 0x134   :  { %v974_v28 = vadd.f32 %v3165_v25, %v4088_v5  ;;  %v1043_v29 = vadd.f32 %v3208_v19, %v971_v24  ;;  %3302 = vmatmul.mubr.bf16.gmra.mrb[44].mxu0 %v1074_v26  ;;  %v3457_v18 = vld [vmem:[%s4676_s5 + $0x84] ss:$16 sps:$4 sm:$0xff]   ;;  %v3460_v51 = vld [vmem:[%s4676_s5 + $0x8c] ss:$16 sps:$4 sm:$0xff]   ;;  %v3455_v19 = vld [vmem:[%s4676_s5 + $0x80] ss:$16 sps:$4 sm:$0xff]  }
 0x135   :  { %3305 = vmatprep.mubr.msk.bf16.mxu0 %vm3680_vm0, %v3679_v12  ;;  %v3458_v21 = vld [vmem:[%s4676_s5 + $0x88] ss:$16 sps:$4 sm:$0xff]   ;;  %v3463_v24 = vld [vmem:[%s4676_s5 + $0xa4] ss:$16 sps:$4 sm:$0xff]   ;;  %v3466_v25 = vld [vmem:[%s4676_s5 + $0xac] ss:$16 sps:$4 sm:$0xff]  }
 0x136   :  { %v1046_v30 = vadd.f32 %v3211_v27, %v974_v28  ;;  %v3166_v31 = vpop.f32.mrb[32].mxu0  ;;  %v1068_v34 = vmax.f32 %v1043_v29, 0.0  ;;  %v3461_v53 = vld [vmem:[%s4676_s5 + $0xa0] ss:$16 sps:$4 sm:$0xff]   ;;  %v3464_v26 = vld [vmem:[%s4676_s5 + $0xa8] ss:$16 sps:$4 sm:$0xff]  }
 0x137   :  { %v3167_v32 = vpop.f32.mrb[33].mxu0  ;;  %v3212_v33 = vpop.f32.mrb[32].mxu1  ;;  %v3469_v27 = vld [vmem:[%s4676_s5 + $0xc4] ss:$16 sps:$4 sm:$0xff]   ;;  %v3472_v28 = vld [vmem:[%s4676_s5 + $0xcc] ss:$16 sps:$4 sm:$0xff]  }
 0x138   :  { %v1069_v38 = vmax.f32 %v1046_v30, 0.0  ;;  %v3168_v39 = vadd.f32 %v3167_v32, %v3166_v31  ;;  %v3169_v40 = vpop.f32.mrb[34].mxu0  ;;  %v3213_v3 = vpop.f32.mrb[33].mxu1  ;;  %v3467_v29 = vld [vmem:[%s4676_s5 + $0xc0] ss:$16 sps:$4 sm:$0xff]  }
 0x139   :  { %v3170_v41 = vpop.f32.mrb[35].mxu0  ;;  %v3214_v42 = vadd.f32 %v3213_v3, %v3212_v33  ;;  %v3215_v43 = vpop.f32.mrb[34].mxu1  ;;  %v3470_v30 = vld [vmem:[%s4676_s5 + $0xc8] ss:$16 sps:$4 sm:$0xff]   ;;  %v3475_v31 = vld [vmem:[%s4676_s5 + $0xe4] ss:$16 sps:$4 sm:$0xff]  }
 0x13a   :  { %v979_v44 = vadd.f32 %v3168_v39, %v4091_v20  ;;  %v3171_v5 = vadd.f32 %v3170_v41, %v3169_v40  ;;  %v3216_v45 = vpop.f32.mrb[35].mxu1  ;;  %v1075_v46 = vpack.c.bf16 %v1069_v38, %v1068_v34  ;;  %v3478_v32 = vld [vmem:[%s4676_s5 + $0xec] ss:$16 sps:$4 sm:$0xff]   ;;  %v3473_v33 = vld [vmem:[%s4676_s5 + $0xe0] ss:$16 sps:$4 sm:$0xff]  }
 0x13b   :  { %v3217_v47 = vadd.f32 %v3216_v45, %v3215_v43  ;;  %v3476_v34 = vld [vmem:[%s4676_s5 + $0xe8] ss:$16 sps:$4 sm:$0xff]   ;;  %v3481_v38 = vld [vmem:[%s4676_s5 + $0x104] ss:$16 sps:$4 sm:$0xff]   ;;  %v3484_v39 = vld [vmem:[%s4676_s5 + $0x10c] ss:$16 sps:$4 sm:$0xff]  }
 0x13c   :  { %v982_v48 = vadd.f32 %v3171_v5, %v4094_v22  ;;  %v1051_v49 = vadd.f32 %v3214_v42, %v979_v44  ;;  %3306 = vmatmul.mubr.bf16.gmra.mrb[48].mxu0 %v1075_v46  ;;  %v3479_v40 = vld [vmem:[%s4676_s5 + $0x100] ss:$16 sps:$4 sm:$0xff]   ;;  %v3482_v3 = vld [vmem:[%s4676_s5 + $0x108] ss:$16 sps:$4 sm:$0xff]   ;;  %v3487_v41 = vld [vmem:[%s4676_s5 + $0x124] ss:$16 sps:$4 sm:$0xff]  }
 0x13d   :  { %3309 = vmatprep.mubr.msk.bf16.mxu0 %vm3680_vm0, %v3679_v12  ;;  %v3490_v42 = vld [vmem:[%s4676_s5 + $0x12c] ss:$16 sps:$4 sm:$0xff]   ;;  %v3485_v43 = vld [vmem:[%s4676_s5 + $0x120] ss:$16 sps:$4 sm:$0xff]   ;;  %v3488_v44 = vld [vmem:[%s4676_s5 + $0x128] ss:$16 sps:$4 sm:$0xff]  }
 0x13e   :  { %v1054_v50 = vadd.f32 %v3217_v47, %v982_v48  ;;  %v3172_v52 = vpop.f32.mrb[36].mxu0  ;;  %v1070_v55 = vmax.f32 %v1051_v49, 0.0  ;;  %v3493_v5 = vld [vmem:[%s4676_s5 + $0x144] ss:$16 sps:$4 sm:$0xff]   ;;  %v3491_v45 = vld [vmem:[%s4676_s5 + $0x140] ss:$16 sps:$4 sm:$0xff]  }
 0x13f   :  { %v3173_v23 = vpop.f32.mrb[37].mxu0  ;;  %v3218_v54 = vpop.f32.mrb[36].mxu1  ;;  %v3496_v46 = vld [vmem:[%s4676_s5 + $0x14c] ss:$16 sps:$4 sm:$0xff]   ;;  %v3494_v47 = vld [vmem:[%s4676_s5 + $0x148] ss:$16 sps:$4 sm:$0xff]  }
 0x140   :  { %v1071_v56 = vmax.f32 %v1054_v50, 0.0  ;;  %v3174_v57 = vadd.f32 %v3173_v23, %v3172_v52  ;;  %v3219_v58 = vpop.f32.mrb[37].mxu1  ;;  %v3175_v20 = vpop.f32.mrb[38].mxu0  ;;  %v3499_v48 = vld [vmem:[%s4676_s5 + $0x164] ss:$16 sps:$4 sm:$0xff]  }
 0x141   :  { %v3220_v59 = vadd.f32 %v3219_v58, %v3218_v54  ;;  %v3176_v60 = vpop.f32.mrb[39].mxu0  ;;  %v3221_v61 = vpop.f32.mrb[38].mxu1  ;;  %v3502_v49 = vld [vmem:[%s4676_s5 + $0x16c] ss:$16 sps:$4 sm:$0xff]   ;;  %v3497_v50 = vld [vmem:[%s4676_s5 + $0x160] ss:$16 sps:$4 sm:$0xff]  }
 0x142   :  { %v987_v62 = vadd.f32 %v3174_v57, %v4097_v36  ;;  %v1076_v22 = vpack.c.bf16 %v1071_v56, %v1070_v55  ;;  %v3222_v63 = vpop.f32.mrb[39].mxu1  ;;  %v3434_v36 = vld [vmem:[%s4676_s5 + $0x8] ss:$16 sps:$4 sm:$0xff]   ;;  %v3505_v23 = vld [vmem:[%s4676_s5 + $0x184] ss:$16 sps:$4 sm:$0xff]  }
 0x143   :  { %2269 = vmatpush1.bf16.msra.mxu0 %v3434_v36  ;;  %v3500_v52 = vld [vmem:[%s4676_s5 + $0x168] ss:$16 sps:$4 sm:$0xff]   ;;  %v3508_v54 = vld [vmem:[%s4676_s5 + $0x18c] ss:$16 sps:$4 sm:$0xff]   ;;  %v3503_v55 = vld [vmem:[%s4676_s5 + $0x180] ss:$16 sps:$4 sm:$0xff]  }
 0x144   :  { %v1059_v0 = vadd.f32 %v3220_v59, %v987_v62  ;;  %3310 = vmatmul.mubr.bf16.gmra.mrb[52].mxu0 %v1076_v22  ;;  %2270 = vmatprep.subr.bf16.mxu0 %v3442_v37  ;;  %v3506_v56 = vld [vmem:[%s4676_s5 + $0x188] ss:$16 sps:$4 sm:$0xff]   ;;  %v3511_v57 = vld [vmem:[%s4676_s5 + $0x1a4] ss:$16 sps:$4 sm:$0xff]   ;;  %v3514_v58 = vld [vmem:[%s4676_s5 + $0x1ac] ss:$16 sps:$4 sm:$0xff]  }
 0x145   :  { %3313 = vmatprep.mubr.msk.bf16.mxu0 %vm3680_vm0, %v3679_v12  ;;  %v3437_v12 = vld [vmem:[%s4676_s5 + $0x20] ss:$16 sps:$4 sm:$0xff]   ;;  %v3512_v59 = vld [vmem:[%s4676_s5 + $0x1a8] ss:$16 sps:$4 sm:$0xff]   ;;  %v3517_v60 = vld [vmem:[%s4676_s5 + $0x1c4] ss:$16 sps:$4 sm:$0xff]  }
 0x146   :  { %v1072_v1 = vmax.f32 %v1059_v0, 0.0  ;;  %2148 = vmatpush1.bf16.msra.mxu1 %v3437_v12  ;;  %v3509_v20 = vld [vmem:[%s4676_s5 + $0x1a0] ss:$16 sps:$4 sm:$0xff]   ;;  %v3520_v61 = vld [vmem:[%s4676_s5 + $0x1cc] ss:$16 sps:$4 sm:$0xff]  }
 0x147   :  { %2271 = vmatpush1.bf16.msra.mxu0 %v3440_v8  ;;  %2149 = vmatprep.subr.bf16.mxu1 %v3445_v9  ;;  %v3515_v62 = vld [vmem:[%s4676_s5 + $0x1c0] ss:$16 sps:$4 sm:$0xff]   ;;  %v3518_v22 = vld [vmem:[%s4676_s5 + $0x1c8] ss:$16 sps:$4 sm:$0xff]   ;;  %v3523_v36 = vld [vmem:[%s4676_s5 + $0x1e4] ss:$16 sps:$4 sm:$0xff]  }
 0x148   :  { %v1077_v2 = vpack.c.bf16 %v1072_v1, %v1072_v1  ;;  %2272 = vmatprep.subr.bf16.mxu0 %v3448_v11  ;;  %v2852_v63 = vld [vmem:[%s4677_s4] ss:$0 sm:$0xff]  ;;  %v3529_v37 = vld [vmem:[%s4676_s5 + $0x204] ss:$16 sps:$4 sm:$0xff]   ;;  %v3532_v9 = vld [vmem:[%s4676_s5 + $0x20c] ss:$16 sps:$4 sm:$0xff]  }
 0x149   :  { %v3521_v12 = vld [vmem:[%s4676_s5 + $0x1e0] ss:$16 sps:$4 sm:$0xff]  }
 0x14a   :  { %2150 = vmatpush1.bf16.msra.mxu1 %v3443_v10 }
 0x14b   :  { %2273 = vmatpush1.bf16.msra.mxu0 %v3446_v13  ;;  %2151 = vmatprep.subr.bf16.mxu1 %v3451_v14 }
 0x14c   :  { %3314 = vmatmul.mubr.bf16.gmra.mrb[56].mxu0 %v1077_v2  ;;  %2274 = vmatprep.subr.bf16.mxu0 %v3454_v15 }
 0x14e   :  { %2152 = vmatpush1.bf16.msra.mxu1 %v3449_v16 }
 0x14f   :  { %2275 = vmatpush1.bf16.msra.mxu0 %v3452_v17  ;;  %2153 = vmatprep.subr.bf16.mxu1 %v3457_v18 }
 0x150   :  { %2276 = vmatprep.subr.bf16.mxu0 %v3460_v51 }
 0x152   :  { %2154 = vmatpush1.bf16.msra.mxu1 %v3455_v19 }
 0x153   :  { %2277 = vmatpush1.bf16.msra.mxu0 %v3458_v21  ;;  %2155 = vmatprep.subr.bf16.mxu1 %v3463_v24 }
 0x154   :  { %2278 = vmatprep.subr.bf16.mxu0 %v3466_v25 }
 0x156   :  { %2156 = vmatpush1.bf16.msra.mxu1 %v3461_v53 }
 0x157   :  { %2279 = vmatpush1.bf16.msra.mxu0 %v3464_v26  ;;  %2157 = vmatprep.subr.bf16.mxu1 %v3469_v27 }
 0x158   :  { %2280 = vmatprep.subr.bf16.mxu0 %v3472_v28 }
 0x15a   :  { %2158 = vmatpush1.bf16.msra.mxu1 %v3467_v29 }
 0x15b   :  { %2281 = vmatpush1.bf16.msra.mxu0 %v3470_v30  ;;  %2159 = vmatprep.subr.bf16.mxu1 %v3475_v31 }
 0x15c   :  { %2282 = vmatprep.subr.bf16.mxu0 %v3478_v32 }
 0x15e   :  { %2160 = vmatpush1.bf16.msra.mxu1 %v3473_v33 }
 0x15f   :  { %2283 = vmatpush1.bf16.msra.mxu0 %v3476_v34  ;;  %2161 = vmatprep.subr.bf16.mxu1 %v3481_v38 }
 0x160   :  { %2284 = vmatprep.subr.bf16.mxu0 %v3484_v39 }
 0x162   :  { %2162 = vmatpush1.bf16.msra.mxu1 %v3479_v40 }
 0x163   :  { %2285 = vmatpush1.bf16.msra.mxu0 %v3482_v3  ;;  %2163 = vmatprep.subr.bf16.mxu1 %v3487_v41 }
 0x164   :  { %2286 = vmatprep.subr.bf16.mxu0 %v3490_v42 }
 0x166   :  { %2164 = vmatpush1.bf16.msra.mxu1 %v3485_v43 }
 0x167   :  { %2287 = vmatpush1.bf16.msra.mxu0 %v3488_v44  ;;  %2165 = vmatprep.subr.bf16.mxu1 %v3493_v5 }
 0x168   :  { %2288 = vmatprep.subr.bf16.mxu0 %v3496_v46 }
 0x16a   :  { %2166 = vmatpush1.bf16.msra.mxu1 %v3491_v45 }
 0x16b   :  { %2289 = vmatpush1.bf16.msra.mxu0 %v3494_v47  ;;  %2167 = vmatprep.subr.bf16.mxu1 %v3499_v48 }
 0x16c   :  { %2290 = vmatprep.subr.bf16.mxu0 %v3502_v49 }
 0x16e   :  { %2168 = vmatpush1.bf16.msra.mxu1 %v3497_v50 }
 0x16f   :  { %2291 = vmatpush1.bf16.msra.mxu0 %v3500_v52  ;;  %2169 = vmatprep.subr.bf16.mxu1 %v3505_v23  ;;  %v3527_v52 = vld [vmem:[%s4676_s5 + $0x200] ss:$16 sps:$4 sm:$0xff]   ;;  %v3530_v23 = vld [vmem:[%s4676_s5 + $0x208] ss:$16 sps:$4 sm:$0xff]  }
 0x170   :  { %2292 = vmatprep.subr.bf16.mxu0 %v3508_v54  ;;  %v3535_v54 = vld [vmem:[%s4676_s5 + $0x224] ss:$16 sps:$4 sm:$0xff]  }
 0x172   :  { %2170 = vmatpush1.bf16.msra.mxu1 %v3503_v55  ;;  %v3538_v55 = vld [vmem:[%s4676_s5 + $0x22c] ss:$16 sps:$4 sm:$0xff]  }
 0x173   :  { %2293 = vmatpush1.bf16.msra.mxu0 %v3506_v56  ;;  %2171 = vmatprep.subr.bf16.mxu1 %v3511_v57  ;;  %v3533_v56 = vld [vmem:[%s4676_s5 + $0x220] ss:$16 sps:$4 sm:$0xff]   ;;  %v3536_v57 = vld [vmem:[%s4676_s5 + $0x228] ss:$16 sps:$4 sm:$0xff]  }
 0x174   :  { %2294 = vmatprep.subr.bf16.mxu0 %v3514_v58  ;;  %v3541_v58 = vld [vmem:[%s4676_s5 + $0x244] ss:$16 sps:$4 sm:$0xff]  }
 0x176   :  { %2172 = vmatpush1.bf16.msra.mxu1 %v3509_v20  ;;  %v3544_v20 = vld [vmem:[%s4676_s5 + $0x24c] ss:$16 sps:$4 sm:$0xff]  }
 0x177   :  { %2295 = vmatpush1.bf16.msra.mxu0 %v3512_v59  ;;  %2173 = vmatprep.subr.bf16.mxu1 %v3517_v60  ;;  %v3539_v59 = vld [vmem:[%s4676_s5 + $0x240] ss:$16 sps:$4 sm:$0xff]   ;;  %v3542_v60 = vld [vmem:[%s4676_s5 + $0x248] ss:$16 sps:$4 sm:$0xff]  }
 0x178   :  { %2296 = vmatprep.subr.bf16.mxu0 %v3520_v61  ;;  %v3547_v61 = vld [vmem:[%s4676_s5 + $0x264] ss:$16 sps:$4 sm:$0xff]  }
 0x17a   :  { %2174 = vmatpush1.bf16.msra.mxu1 %v3515_v62  ;;  %v3550_v62 = vld [vmem:[%s4676_s5 + $0x26c] ss:$16 sps:$4 sm:$0xff]  }
 0x17b   :  { %2297 = vmatpush1.bf16.msra.mxu0 %v3518_v22  ;;  %2175 = vmatprep.subr.bf16.mxu1 %v3523_v36 }
 0x17c   :  { %2298 = vmatprep.subr.bf16.mxu0 %v3526_v6  ;;  %v3551_v6 = vld [vmem:[%s4676_s5 + $0x280] ss:$16 sps:$4 sm:$0xff]  }
 0x17e   :  { %2176 = vmatpush1.bf16.msra.mxu1 %v3521_v12 }
 0x17f   :  { %2299 = vmatpush1.bf16.msra.mxu0 %v3524_v7  ;;  %2186 = vmatprep.subr.bf16.mxu1 %v3529_v37  ;;  %v3554_v7 = vld [vmem:[%s4676_s5 + $0x288] ss:$16 sps:$4 sm:$0xff]   ;;  %v3562_v37 = vld [vmem:[%s4676_s5 + $0x2ac] ss:$16 sps:$4 sm:$0xff]  }
 0x180   :  { %2309 = vmatprep.subr.bf16.mxu0 %v3532_v9  ;;  %v3557_v9 = vld [vmem:[%s4676_s5 + $0x2a0] ss:$16 sps:$4 sm:$0xff]  }
 0x1ff   :  { %v1183_v0 = vpop.f32.mrb[40].mxu0 }
 0x200   :  { %v1184_v1 = vadd.f32 %v2852_v63, %v1183_v0  ;;  %v3299_v2 = vpop.f32.mrb[41].mxu0  ;;  %v3548_v0 = vld [vmem:[%s4676_s5 + $0x268] ss:$16 sps:$4 sm:$0xff]  }
 0x201   :  { %v1186_v35 = vpop.f32.mrb[42].mxu0 }
 0x202   :  { %v3300_v4 = vpop.f32.mrb[43].mxu0  ;;  %v1187_v10 = vadd.f32 %v2852_v63, %v1186_v35  ;;  %v1221_v44 = vmax.f32 %v1184_v1, 0.0  ;;  %v3553_v35 = vld [vmem:[%s4676_s5 + $0x284] ss:$16 sps:$4 sm:$0xff]  }
 0x203   :  { %v3556_v4 = vld [vmem:[%s4676_s5 + $0x28c] ss:$16 sps:$4 sm:$0xff]  }
 0x204   :  { %v1222_v17 = vmax.f32 %v1187_v10, 0.0  ;;  %v3560_v10 = vld [vmem:[%s4676_s5 + $0x2a8] ss:$16 sps:$4 sm:$0xff]  }
 0x207   :  { %v1191_v8 = vpop.f32.mrb[44].mxu0 }
 0x208   :  { %v1192_v11 = vadd.f32 %v2852_v63, %v1191_v8  ;;  %v3303_v13 = vpop.f32.mrb[45].mxu0  ;;  %v3559_v8 = vld [vmem:[%s4676_s5 + $0x2a4] ss:$16 sps:$4 sm:$0xff]  }
 0x209   :  { %v1194_v14 = vpop.f32.mrb[46].mxu0  ;;  %v3568_v13 = vld [vmem:[%s4676_s5 + $0x2cc] ss:$16 sps:$4 sm:$0xff]  }
 0x20a   :  { %v1195_v15 = vadd.f32 %v2852_v63, %v1194_v14  ;;  %v3304_v16 = vpop.f32.mrb[47].mxu0  ;;  %v1223_v5 = vmax.f32 %v1192_v11, 0.0  ;;  %v3565_v11 = vld [vmem:[%s4676_s5 + $0x2c4] ss:$16 sps:$4 sm:$0xff]   ;;  %v3563_v14 = vld [vmem:[%s4676_s5 + $0x2c0] ss:$16 sps:$4 sm:$0xff]  }
 0x20b   :  { %v3571_v16 = vld [vmem:[%s4676_s5 + $0x2e4] ss:$16 sps:$4 sm:$0xff]  }
 0x20c   :  { %v1224_v18 = vmax.f32 %v1195_v15, 0.0  ;;  %v3566_v15 = vld [vmem:[%s4676_s5 + $0x2c8] ss:$16 sps:$4 sm:$0xff]  }
 0x20e   :  { %v3341_v51 = vpack.i.bf16 %v1222_v17, %v1224_v18  ;;  %v3574_v17 = vld [vmem:[%s4676_s5 + $0x2ec] ss:$16 sps:$4 sm:$0xff]   ;;  %v3569_v18 = vld [vmem:[%s4676_s5 + $0x2e0] ss:$16 sps:$4 sm:$0xff]  }
 0x20f   :  { %v1199_v19 = vpop.f32.mrb[48].mxu0 }
 0x210   :  { %v4317_v21 = vadd.f32 %v2852_v63, %v1199_v19  ;;  %3342 = vrot.lane.b32.xlu0 %v3341_v51, %s3681_s19  ;;  %v3307_v24 = vpop.f32.mrb[49].mxu0  ;;  %v3572_v51 = vld [vmem:[%s4676_s5 + $0x2e8] ss:$16 sps:$4 sm:$0xff]   ;;  %v3577_v19 = vld [vmem:[%s4676_s5 + $0x304] ss:$16 sps:$4 sm:$0xff]  }
 0x211   :  { %v1202_v25 = vpop.f32.mrb[50].mxu0  ;;  %v3580_v24 = vld [vmem:[%s4676_s5 + $0x30c] ss:$16 sps:$4 sm:$0xff]  }
 0x212   :  { %v3308_v53 = vpop.f32.mrb[51].mxu0  ;;  %v1203_v27 = vadd.f32 %v2852_v63, %v1202_v25  ;;  %v3575_v25 = vld [vmem:[%s4676_s5 + $0x300] ss:$16 sps:$4 sm:$0xff]  }
 0x213   :  { %v3578_v53 = vld [vmem:[%s4676_s5 + $0x308] ss:$16 sps:$4 sm:$0xff]  }
 0x214   :  { %v1226_v33 = vmax.f32 %v1203_v27, 0.0  ;;  %v3586_v27 = vld [vmem:[%s4676_s5 + $0x32c] ss:$16 sps:$4 sm:$0xff]  }
 0x217   :  { %v1207_v26 = vpop.f32.mrb[52].mxu0 }
 0x218   :  { %v1208_v28 = vadd.f32 %v2852_v63, %v1207_v26  ;;  %v3311_v29 = vpop.f32.mrb[53].mxu0  ;;  %v3583_v26 = vld [vmem:[%s4676_s5 + $0x324] ss:$16 sps:$4 sm:$0xff]  }
 0x219   :  { %v1210_v30 = vpop.f32.mrb[54].mxu0  ;;  %v3584_v29 = vld [vmem:[%s4676_s5 + $0x328] ss:$16 sps:$4 sm:$0xff]  }
 0x21a   :  { %v1211_v31 = vadd.f32 %v2852_v63, %v1210_v30  ;;  %v3312_v32 = vpop.f32.mrb[55].mxu0  ;;  %v1227_v1 = vmax.f32 %v1208_v28, 0.0  ;;  %v3581_v28 = vld [vmem:[%s4676_s5 + $0x320] ss:$16 sps:$4 sm:$0xff]   ;;  %v3589_v30 = vld [vmem:[%s4676_s5 + $0x344] ss:$16 sps:$4 sm:$0xff]  }
 0x21b   :  { %v3587_v32 = vld [vmem:[%s4676_s5 + $0x340] ss:$16 sps:$4 sm:$0xff]  }
 0x21c   :  { %v1228_v34 = vmax.f32 %v1211_v31, 0.0  ;;  %v3592_v31 = vld [vmem:[%s4676_s5 + $0x34c] ss:$16 sps:$4 sm:$0xff]  }
 0x21e   :  { %v3346_v38 = vpack.i.bf16 %v1226_v33, %v1228_v34  ;;  %v3590_v33 = vld [vmem:[%s4676_s5 + $0x348] ss:$16 sps:$4 sm:$0xff]   ;;  %v3595_v34 = vld [vmem:[%s4676_s5 + $0x364] ss:$16 sps:$4 sm:$0xff]  }
 0x21f   :  { %v1215_v39 = vpop.f32.mrb[56].mxu0 }
 0x220   :  { %v4319_v40 = vadd.f32 %v2852_v63, %v1215_v39  ;;  %3347 = vrot.lane.b32.xlu0 %v3346_v38, %s3681_s19  ;;  %v3315_v3 = vpop.f32.mrb[57].mxu0  ;;  %v3545_v63 = vld [vmem:[%s4676_s5 + $0x260] ss:$16 sps:$4 sm:$0xff]   ;;  %v3598_v38 = vld [vmem:[%s4676_s5 + $0x36c] ss:$16 sps:$4 sm:$0xff]  }
 0x221   :  { %v1218_v41 = vpop.f32.mrb[58].mxu0  ;;  %v3593_v39 = vld [vmem:[%s4676_s5 + $0x360] ss:$16 sps:$4 sm:$0xff]   ;;  %v3596_v3 = vld [vmem:[%s4676_s5 + $0x368] ss:$16 sps:$4 sm:$0xff]  }
 0x222   :  { %v3316_v42 = vpop.f32.mrb[59].mxu0  ;;  %v3601_v41 = vld [vmem:[%s4676_s5 + $0x384] ss:$16 sps:$4 sm:$0xff]  }
 0x223   :  { %v3604_v42 = vld [vmem:[%s4676_s5 + $0x38c] ss:$16 sps:$4 sm:$0xff]  }
 0x282   :  { %v3343_v43 = vpop.permute.xlu0 %3342 }
 0x283   :  { %v3345_v45 = vunpack.i.h.bf16 %v3343_v43  ;;  %v3344_v46 = vunpack.i.l.bf16 %v3343_v43  ;;  %v3599_v43 = vld [vmem:[%s4676_s5 + $0x380] ss:$16 sps:$4 sm:$0xff]  }
 0x285   :  { %v1247_v47 = vsel %vm1246_vm1, %v1221_v44, %v3345_v45  ;;  %v1248_v48 = vsel %vm1246_vm1, %v1223_v5, %v3344_v46  ;;  %v3602_v44 = vld [vmem:[%s4676_s5 + $0x388] ss:$16 sps:$4 sm:$0xff]   ;;  %v3607_v5 = vld [vmem:[%s4676_s5 + $0x3a4] ss:$16 sps:$4 sm:$0xff]   ;;  %v3610_v45 = vld [vmem:[%s4676_s5 + $0x3ac] ss:$16 sps:$4 sm:$0xff]  }
 0x286   :  { %v1251_v49 = vpack.c.bf16 %v1247_v47, %v1247_v47  ;;  %v1252_v50 = vpack.c.bf16 %v1248_v48, %v1248_v48  ;;  %v3605_v46 = vld [vmem:[%s4676_s5 + $0x3a0] ss:$16 sps:$4 sm:$0xff]   ;;  %v3608_v47 = vld [vmem:[%s4676_s5 + $0x3a8] ss:$16 sps:$4 sm:$0xff]   ;;  %v3613_v48 = vld [vmem:[%s4676_s5 + $0x3c4] ss:$16 sps:$4 sm:$0xff]  }
 0x288   :  { %2177 = vmatprep.mubr.bf16.mxu1 %v1252_v50  ;;  %2300 = vmatprep.mubr.bf16.mxu0 %v1252_v50  ;;  %v3611_v50 = vld [vmem:[%s4676_s5 + $0x3c0] ss:$16 sps:$4 sm:$0xff]  }
 0x289   :  { %2178 = vmatmul.mubr.bf16.vlgmr.msra.gmra.mrb[40].mxu1 %v1251_v49  ;;  %2301 = vmatmul.mubr.bf16.vlgmr.msra.gmra.mrb[60].mxu0 %v1251_v49  ;;  %v3616_v49 = vld [vmem:[%s4676_s5 + $0x3cc] ss:$16 sps:$4 sm:$0xff]  }
 0x28a   :  { %2187 = vmatpush1.bf16.msra.mxu1 %v3527_v52  ;;  %2310 = vmatpush1.bf16.msra.mxu0 %v3530_v23  ;;  %v3614_v52 = vld [vmem:[%s4676_s5 + $0x3c8] ss:$16 sps:$4 sm:$0xff]   ;;  %v3619_v23 = vld [vmem:[%s4676_s5 + $0x3e4] ss:$16 sps:$4 sm:$0xff]  }
 0x28b   :  { %2188 = vmatprep.subr.bf16.mxu1 %v3535_v54  ;;  %2311 = vmatprep.subr.bf16.mxu0 %v3538_v55  ;;  %v3622_v54 = vld [vmem:[%s4676_s5 + $0x3ec] ss:$16 sps:$4 sm:$0xff]  }
 0x28e   :  { %2189 = vmatpush1.bf16.msra.mxu1 %v3533_v56  ;;  %2312 = vmatpush1.bf16.msra.mxu0 %v3536_v57  ;;  %v1225_v56 = vmax.f32 %v4317_v21, 0.0  ;;  %v3617_v57 = vld [vmem:[%s4676_s5 + $0x3e0] ss:$16 sps:$4 sm:$0xff]   ;;  %v3628_v21 = vld [vmem:[%s4676_s5 + $0x40c] ss:$16 sps:$4 sm:$0xff]  }
 0x28f   :  { %2190 = vmatprep.subr.bf16.mxu1 %v3541_v58  ;;  %2313 = vmatprep.subr.bf16.mxu0 %v3544_v20  ;;  %v3620_v58 = vld [vmem:[%s4676_s5 + $0x3e8] ss:$16 sps:$4 sm:$0xff]   ;;  %v3625_v20 = vld [vmem:[%s4676_s5 + $0x404] ss:$16 sps:$4 sm:$0xff]  }
 0x292   :  { %2191 = vmatpush1.bf16.msra.mxu1 %v3539_v59  ;;  %2314 = vmatpush1.bf16.msra.mxu0 %v3542_v60  ;;  %v4359_v22 = vpop.permute.xlu0 %3347  ;;  %v3623_v60 = vld [vmem:[%s4676_s5 + $0x400] ss:$16 sps:$4 sm:$0xff]  }
 0x293   :  { %v3349_v2 = vunpack.i.l.bf16 %v4359_v22  ;;  %2192 = vmatprep.subr.bf16.mxu1 %v3547_v61  ;;  %2315 = vmatprep.subr.bf16.mxu0 %v3550_v62  ;;  %v3350_v55 = vunpack.i.h.bf16 %v4359_v22  ;;  %v3626_v61 = vld [vmem:[%s4676_s5 + $0x408] ss:$16 sps:$4 sm:$0xff]   ;;  %v3631_v22 = vld [vmem:[%s4676_s5 + $0x424] ss:$16 sps:$4 sm:$0xff]  }
 0x295   :  { %v1250_v36 = vsel %vm1246_vm1, %v1227_v1, %v3349_v2  ;;  %v1249_v59 = vsel %vm1246_vm1, %v1225_v56, %v3350_v55  ;;  %v3632_v1 = vld [vmem:[%s4676_s5 + $0x428] ss:$16 sps:$4 sm:$0xff]   ;;  %v3637_v2 = vld [vmem:[%s4676_s5 + $0x444] ss:$16 sps:$4 sm:$0xff]  }
 0x296   :  { %2193 = vmatpush1.bf16.msra.mxu1 %v3545_v63  ;;  %2316 = vmatpush1.bf16.msra.mxu0 %v3548_v0  ;;  %v1254_v12 = vpack.c.bf16 %v1250_v36, %v1250_v36  ;;  %v1253_v62 = vpack.c.bf16 %v1249_v59, %v1249_v59  ;;  %v3634_v63 = vld [vmem:[%s4676_s5 + $0x42c] ss:$16 sps:$4 sm:$0xff]   ;;  %v3629_v0 = vld [vmem:[%s4676_s5 + $0x420] ss:$16 sps:$4 sm:$0xff]  }
 0x297   :  { %2194 = vmatprep.subr.bf16.mxu1 %v3553_v35  ;;  %2317 = vmatprep.subr.bf16.mxu0 %v3556_v4  ;;  %v3640_v35 = vld [vmem:[%s4676_s5 + $0x44c] ss:$16 sps:$4 sm:$0xff]   ;;  %v3682_v4 = vmov 0   ;;  %v3635_v36 = vld [vmem:[%s4676_s5 + $0x440] ss:$16 sps:$4 sm:$0xff]  }
 0x298   :  { %2218 = vmatprep.mubr.bf16.mxu1 %v1254_v12  ;;  %2341 = vmatprep.mubr.bf16.mxu0 %v1254_v12  ;;  %v3643_v12 = vld [vmem:[%s4676_s5 + $0x464] ss:$16 sps:$4 sm:$0xff]   ;;  %v3666_v59 = vld [vmem:[%s4678_s7 + $0x88] sm:$0xff]  }
 0x29a   :  { %2195 = vmatpush1.bf16.msra.mxu1 %v3551_v6  ;;  %2318 = vmatpush1.bf16.msra.mxu0 %v3554_v7  ;;  %v3638_v6 = vld [vmem:[%s4676_s5 + $0x448] ss:$16 sps:$4 sm:$0xff]   ;;  %v3646_v7 = vld [vmem:[%s4676_s5 + $0x46c] ss:$16 sps:$4 sm:$0xff]  }
 0x29b   :  { %2196 = vmatprep.subr.bf16.mxu1 %v3559_v8  ;;  %2319 = vmatprep.subr.bf16.mxu0 %v3562_v37  ;;  %v3641_v8 = vld [vmem:[%s4676_s5 + $0x460] ss:$16 sps:$4 sm:$0xff]   ;;  %v3644_v37 = vld [vmem:[%s4676_s5 + $0x468] ss:$16 sps:$4 sm:$0xff]  }
 0x29e   :  { %2197 = vmatpush1.bf16.msra.mxu1 %v3557_v9  ;;  %2320 = vmatpush1.bf16.msra.mxu0 %v3560_v10  ;;  %v1229_v9 = vmax.f32 %v4319_v40, 0.0  ;;  %v3647_v10 = vld [vmem:[%s4678_s7 + $0x40] sm:$0xff]   ;;  %v3650_v40 = vld [vmem:[%s4678_s7 + $0x8] sm:$0xff]  }
 0x29f   :  { %2198 = vmatprep.subr.bf16.mxu1 %v3565_v11  ;;  %2321 = vmatprep.subr.bf16.mxu0 %v3568_v13  ;;  %v3648_v11 = vld [vmem:[%s4678_s7] sm:$0xff]  }
 0x2a0   :  { %v1255_v13 = vpack.c.bf16 %v1229_v9, %v1229_v9 }
 0x2a2   :  { %2199 = vmatpush1.bf16.msra.mxu1 %v3563_v14  ;;  %2322 = vmatpush1.bf16.msra.mxu0 %v3566_v15  ;;  %v3649_v14 = vld [vmem:[%s4678_s7 + $0x48] sm:$0xff]   ;;  %v3651_v15 = vld [vmem:[%s4678_s7 + $0x50] sm:$0xff]  }
 0x2a3   :  { %2200 = vmatprep.subr.bf16.mxu1 %v3571_v16  ;;  %2323 = vmatprep.subr.bf16.mxu0 %v3574_v17  ;;  %v3652_v16 = vld [vmem:[%s4678_s7 + $0x10] sm:$0xff]   ;;  %v3653_v17 = vld [vmem:[%s4678_s7 + $0x58] sm:$0xff]  }
 0x2a6   :  { %2201 = vmatpush1.bf16.msra.mxu1 %v3569_v18  ;;  %2324 = vmatpush1.bf16.msra.mxu0 %v3572_v51  ;;  %v3654_v18 = vld [vmem:[%s4678_s7 + $0x18] sm:$0xff]   ;;  %v3655_v51 = vld [vmem:[%s4678_s7 + $0x60] sm:$0xff]  }
 0x2a7   :  { %2202 = vmatprep.subr.bf16.mxu1 %v3577_v19  ;;  %2325 = vmatprep.subr.bf16.mxu0 %v3580_v24  ;;  %v3656_v19 = vld [vmem:[%s4678_s7 + $0x20] sm:$0xff]   ;;  %v3657_v24 = vld [vmem:[%s4678_s7 + $0x68] sm:$0xff]  }
 0x2aa   :  { %2203 = vmatpush1.bf16.msra.mxu1 %v3575_v25  ;;  %2326 = vmatpush1.bf16.msra.mxu0 %v3578_v53  ;;  %v3658_v25 = vld [vmem:[%s4678_s7 + $0x28] sm:$0xff]   ;;  %v3659_v53 = vld [vmem:[%s4678_s7 + $0x70] sm:$0xff]  }
 0x2ab   :  { %2204 = vmatprep.subr.bf16.mxu1 %v3583_v26  ;;  %2327 = vmatprep.subr.bf16.mxu0 %v3586_v27  ;;  %v3660_v26 = vld [vmem:[%s4678_s7 + $0x30] sm:$0xff]   ;;  %v3661_v27 = vld [vmem:[%s4678_s7 + $0x78] sm:$0xff]  }
 0x2ae   :  { %2205 = vmatpush1.bf16.msra.mxu1 %v3581_v28  ;;  %2328 = vmatpush1.bf16.msra.mxu0 %v3584_v29  ;;  %v3662_v28 = vld [vmem:[%s4678_s7 + $0x38] sm:$0xff]   ;;  %v3663_v29 = vld [vmem:[%s4678_s7 + $0xc0] sm:$0xff]  }
 0x2af   :  { %2206 = vmatprep.subr.bf16.mxu1 %v3589_v30  ;;  %2329 = vmatprep.subr.bf16.mxu0 %v3592_v31  ;;  %v1402_v30 = vlaneseq }
 0x2b1   :  { %v1403_v31 = vshrl.u32 %v1402_v30, 7 }
 0x2b2   :  { %2207 = vmatpush1.bf16.msra.mxu1 %v3587_v32  ;;  %2330 = vmatpush1.bf16.msra.mxu0 %v3590_v33  ;;  %v1400_v33 = vld [vmem:[%s4679_s6] sm:$0xf] }
 0x2b3   :  { %2208 = vmatprep.subr.bf16.mxu1 %v3595_v34  ;;  %2331 = vmatprep.subr.bf16.mxu0 %v3598_v38  ;;  %v1404_v32 = vsub.s32 0, %v1403_v31  ;;  %v1408_v34 = vsub.s32 1, %v1403_v31  ;;  %v1416_v38 = vsub.s32 3, %v1403_v31 }
 0x2b6   :  { %2209 = vmatpush1.bf16.msra.mxu1 %v3593_v39  ;;  %2332 = vmatpush1.bf16.msra.mxu0 %v3596_v3  ;;  %v1405_v39 = vrot.slane %v1400_v33, %v1404_v32  ;;  %v1409_v3 = vrot.slane %v1400_v33, %v1408_v34 }
 0x2b7   :  { %2210 = vmatprep.subr.bf16.mxu1 %v3601_v41  ;;  %2333 = vmatprep.subr.bf16.mxu0 %v3604_v42  ;;  %v1417_v41 = vrot.slane %v1400_v33, %v1416_v38 }
 0x2ba   :  { %2211 = vmatpush1.bf16.msra.mxu1 %v3599_v43  ;;  %2334 = vmatpush1.bf16.msra.mxu0 %v3602_v44 }
 0x2bb   :  { %2212 = vmatprep.subr.bf16.mxu1 %v3607_v5  ;;  %2335 = vmatprep.subr.bf16.mxu0 %v3610_v45 }
 0x2be   :  { %2213 = vmatpush1.bf16.msra.mxu1 %v3605_v46  ;;  %2336 = vmatpush1.bf16.msra.mxu0 %v3608_v47 }
 0x2bf   :  { %2214 = vmatprep.subr.bf16.mxu1 %v3613_v48  ;;  %2337 = vmatprep.subr.bf16.mxu0 %v3616_v49 }
 0x2c2   :  { %2215 = vmatpush1.bf16.msra.mxu1 %v3611_v50  ;;  %2338 = vmatpush1.bf16.msra.mxu0 %v3614_v52 }
 0x2c3   :  { %2216 = vmatprep.subr.bf16.mxu1 %v3619_v23  ;;  %2339 = vmatprep.subr.bf16.mxu0 %v3622_v54 }
 0x2c6   :  { %2217 = vmatpush1.bf16.msra.mxu1 %v3617_v57  ;;  %2340 = vmatpush1.bf16.msra.mxu0 %v3620_v58  ;;  %v3664_v57 = vld [vmem:[%s4678_s7 + $0x80] sm:$0xff]  }
 0x2c7   :  { %2227 = vmatprep.subr.bf16.mxu1 %v3625_v20  ;;  %2350 = vmatprep.subr.bf16.mxu0 %v3628_v21  ;;  %v3665_v20 = vld [vmem:[%s4678_s7 + $0xc8] sm:$0xff]  }
 0x2c9   :  { %2219 = vmatmul.mubr.bf16.vlgmr.msra.gmra.mrb[40].mxu1 %v1253_v62  ;;  %2342 = vmatmul.mubr.bf16.vlgmr.msra.gmra.mrb[60].mxu0 %v1253_v62  ;;  %v3669_v62 = vld [vmem:[%s4678_s7 + $0xd8] sm:$0xff]  }
 0x2ca   :  { %2228 = vmatpush1.bf16.msra.mxu1 %v3623_v60  ;;  %2351 = vmatpush1.bf16.msra.mxu0 %v3626_v61  ;;  %v3667_v60 = vld [vmem:[%s4678_s7 + $0xd0] sm:$0xff]  }
 0x2cb   :  { %2229 = vmatprep.subr.bf16.mxu1 %v3631_v22  ;;  %2352 = vmatprep.subr.bf16.mxu0 %v3634_v63  ;;  %v3668_v61 = vld [vmem:[%s4678_s7 + $0x90] sm:$0xff]   ;;  %v3670_v22 = vld [vmem:[%s4678_s7 + $0x98] sm:$0xff]   ;;  %v3671_v63 = vld [vmem:[%s4678_s7 + $0xe0] sm:$0xff]  }
 0x2cc   :  { %2259 = vmatprep.mubr.bf16.mxu1 %v3682_v4  ;;  %2382 = vmatprep.mubr.bf16.mxu0 %v3682_v4 }
 0x2ce   :  { %2230 = vmatpush1.bf16.msra.mxu1 %v3629_v0  ;;  %2353 = vmatpush1.bf16.msra.mxu0 %v3632_v1  ;;  %v3672_v0 = vld [vmem:[%s4678_s7 + $0xa0] sm:$0xff]   ;;  %v1412_v1 = vsub.s32 2, %v1403_v31 }
 0x2cf   :  { %2231 = vmatprep.subr.bf16.mxu1 %v3637_v2  ;;  %2354 = vmatprep.subr.bf16.mxu0 %v3640_v35  ;;  %v3673_v2 = vld [vmem:[%s4678_s7 + $0xe8] sm:$0xff]  }
 0x2d0   :  { %v3674_v35 = vld [vmem:[%s4678_s7 + $0xa8] sm:$0xff]   ;;  %v1413_v4 = vrot.slane %v1400_v33, %v1412_v1 }
 0x2d2   :  { %2232 = vmatpush1.bf16.msra.mxu1 %v3635_v36  ;;  %2355 = vmatpush1.bf16.msra.mxu0 %v3638_v6  ;;  %v3675_v36 = vld [vmem:[%s4678_s7 + $0xf0] sm:$0xff]  }
 0x2d3   :  { %2233 = vmatprep.subr.bf16.mxu1 %v3643_v12  ;;  %2356 = vmatprep.subr.bf16.mxu0 %v3646_v7  ;;  %v3676_v6 = vld [vmem:[%s4678_s7 + $0xb0] sm:$0xff]   ;;  %v3677_v7 = vld [vmem:[%s4678_s7 + $0xf8] sm:$0xff]  }
 0x2d6   :  { %2234 = vmatpush1.bf16.msra.mxu1 %v3641_v8  ;;  %2357 = vmatpush1.bf16.msra.mxu0 %v3644_v37  ;;  %v3678_v8 = vld [vmem:[%s4678_s7 + $0xb8] sm:$0xff]  }
 0x2d7   :  { %3237 = vmatprep.subr.bf16.mxu1 %v3647_v10 }
 0x2d9   :  { %3005 = vmatmul.mubr.msk.bf16.vlgmr.msra.gmra.mrb[40].mxu1 %vm1246_vm1, %v1255_v13  ;;  %3006 = vmatmul.mubr.msk.bf16.vlgmr.msra.gmra.mrb[60].mxu0 %vm1246_vm1, %v1255_v13 }
 0x2da   :  { %3238 = vmatpush3.bf16.msra.mxu1 %v3648_v11 }
 0x2db   :  { %3239 = vmatprep.subr.bf16.mxu1 %v3649_v14 }
 0x2de   :  { %3240 = vmatpush3.bf16.msra.mxu1 %v3650_v40 }
 0x2df   :  { %3241 = vmatprep.subr.bf16.mxu1 %v3651_v15  ;;  %v3007_v15 = vld [vmem:[%s4680_s8] ss:$0 sm:$0xff] }
 0x2e2   :  { %3242 = vmatpush3.bf16.msra.mxu1 %v3652_v16 }
 0x2e3   :  { %3243 = vmatprep.subr.bf16.mxu1 %v3653_v17 }
 0x2e6   :  { %3244 = vmatpush3.bf16.msra.mxu1 %v3654_v18 }
 0x2e7   :  { %3245 = vmatprep.subr.bf16.mxu1 %v3655_v51 }
 0x2ea   :  { %3246 = vmatpush3.bf16.msra.mxu1 %v3656_v19 }
 0x2eb   :  { %3247 = vmatprep.subr.bf16.mxu1 %v3657_v24 }
 0x2ee   :  { %3248 = vmatpush3.bf16.msra.mxu1 %v3658_v25 }
 0x2ef   :  { %3249 = vmatprep.subr.bf16.mxu1 %v3659_v53 }
 0x2f2   :  { %3250 = vmatpush3.bf16.msra.mxu1 %v3660_v26 }
 0x2f3   :  { %3251 = vmatprep.subr.bf16.mxu1 %v3661_v27 }
 0x2f6   :  { %3252 = vmatpush3.bf16.msra.mxu1 %v3662_v28 }
 0x2f7   :  { %3259 = vmatprep.subr.bf16.mxu1 %v3663_v29 }
 0x3ac   :  { %v2261_v42 = vpop.f32.mrb[40].mxu1  ;;  %v2384_v43 = vpop.f32.mrb[60].mxu0 }
 0x3ad   :  { %v3317_v44 = vadd.f32 %v2261_v42, %v1405_v39  ;;  %v2263_v5 = vpop.f32.mrb[41].mxu1  ;;  %v2386_v45 = vpop.f32.mrb[61].mxu0  ;;  %v3319_v12 = vadd.f32 %v2384_v43, %v1413_v4 }
 0x3ae   :  { %v3318_v46 = vadd.f32 %v2263_v5, %v1409_v3  ;;  %v3320_v47 = vadd.f32 %v2386_v45, %v1417_v41  ;;  %v2265_v48 = vpop.f32.mrb[42].mxu1  ;;  %v2388_v49 = vpop.f32.mrb[62].mxu0 }
 0x3af   :  { %v2391_v50 = vmax.f32 %v3317_v44, 0.0  ;;  %v2266_v52 = vpop.f32.mrb[43].mxu1  ;;  %v2389_v23 = vpop.f32.mrb[63].mxu0  ;;  %v2393_v37 = vmax.f32 %v3319_v12, 0.0 }
 0x3b0   :  { %v2392_v54 = vmax.f32 %v3318_v46, 0.0  ;;  %v2394_v55 = vmax.f32 %v3320_v47, 0.0 }
 0x3b1   :  { %v2395_v58 = vpack.c.bf16 %v2391_v50, %v2391_v50  ;;  %v2397_v9 = vpack.c.bf16 %v2393_v37, %v2393_v37 }
 0x3b2   :  { %v2396_v56 = vpack.c.bf16 %v2392_v54, %v2392_v54  ;;  %v2398_v21 = vpack.c.bf16 %v2394_v55, %v2394_v55 }
 0x3b4   :  { %2694 = vmatprep.mubr.bf16.mxu1 %v2396_v56 }
 0x3b5   :  { %2695 = vmatmul.mubr.bf16.vlgmr.msra.gmra.mrb[44].mxu1 %v2395_v58 }
 0x3b6   :  { %3260 = vmatpush3.bf16.msra.mxu1 %v3664_v57  ;;  %2734 = vmatprep.mubr.bf16.mxu1 %v2398_v21 }
 0x3b7   :  { %3261 = vmatprep.subr.bf16.mxu1 %v3665_v20 }
 0x3ba   :  { %3262 = vmatpush3.bf16.msra.mxu1 %v3666_v59 }
 0x3bb   :  { %3263 = vmatprep.subr.bf16.mxu1 %v3667_v60 }
 0x3be   :  { %3264 = vmatpush3.bf16.msra.mxu1 %v3668_v61 }
 0x3bf   :  { %3265 = vmatprep.subr.bf16.mxu1 %v3669_v62 }
 0x3c2   :  { %3266 = vmatpush3.bf16.msra.mxu1 %v3670_v22 }
 0x3c3   :  { %3267 = vmatprep.subr.bf16.mxu1 %v3671_v63 }
 0x3c6   :  { %3268 = vmatpush3.bf16.msra.mxu1 %v3672_v0 }
 0x3c7   :  { %3269 = vmatprep.subr.bf16.mxu1 %v3673_v2 }
 0x3ca   :  { %3270 = vmatpush3.bf16.msra.mxu1 %v3674_v35 }
 0x3cb   :  { %3271 = vmatprep.subr.bf16.mxu1 %v3675_v36 }
 0x3ce   :  { %3272 = vmatpush3.bf16.msra.mxu1 %v3676_v6 }
 0x3cf   :  { %3273 = vmatprep.subr.bf16.mxu1 %v3677_v7 }
 0x3d2   :  { %3274 = vmatpush3.bf16.msra.mxu1 %v3678_v8 }
 0x3d5   :  { %2735 = vmatmul.mubr.bf16.vlgmr.msra.gmra.mrb[48].mxu1 %v2397_v9 }
 0x488   :  { %v3253_v10 = vpop.f32.mrb[44].mxu1 }
 0x489   :  { %v3254_v11 = vpop.f32.mrb[45].mxu1 }
 0x48a   :  { %v3255_v13 = vadd.f32 %v3254_v11, %v3253_v10  ;;  %v3256_v14 = vpop.f32.mrb[46].mxu1 }
 0x48b   :  { %v3257_v40 = vpop.f32.mrb[47].mxu1 }
 0x48c   :  { %v2697_v18 = vadd.f32 %v3255_v13, %v3007_v15 }
 0x4a8   :  { %v3275_v16 = vpop.f32.mrb[48].mxu1 }
 0x4a9   :  { %v3276_v17 = vpop.f32.mrb[49].mxu1 }
 0x4aa   :  { %v3277_v51 = vadd.f32 %v3276_v17, %v3275_v16  ;;  %v3278_v19 = vpop.f32.mrb[50].mxu1 }
 0x4ab   :  { %v3279_v24 = vpop.f32.mrb[51].mxu1 }
 0x4ac   :  { %v2737_v25 = vadd.f32 %v3277_v51, %v2697_v18 }
 0x4ae   :  { %2742 = vst [vmem:[%s4681_s9] sm:$0xff] %v2737_v25 }

</bundles_post_ra>
